<compile_context>
chip_gen: v7x
topology: tpu7x:2x2x1
jax: 0.10.0
libtpu: 0.0.40
codegen_flags: <defaults>
</compile_context>

<pallas_src>
import math

import jax
import jax.numpy as jnp
from jax.experimental import pallas as pl
from jax.experimental.pallas import tpu as pltpu

# ---- small synthetic BERT config ----------------------------------------------------
HIDDEN = 128
N_HEADS = 2
HEAD_DIM = HIDDEN // N_HEADS
INTERMEDIATE = 256
N_LAYERS = 2
VOCAB = 512
MAX_POS = 64
SEQ = 8
BATCH = 2
LN_EPS = 1e-12
SCALE = 1.0 / math.sqrt(HEAD_DIM)
BS = BATCH * SEQ


# ---- shared math helpers (used both in-kernel and in the pure-JAX reference) --------
def _layer_norm(x, g, b):
    mu = jnp.mean(x, axis=-1, keepdims=True)
    var = jnp.mean(jnp.square(x - mu), axis=-1, keepdims=True)
    return (x - mu) * jax.lax.rsqrt(var + LN_EPS) * g + b


def _gelu(x):
    # TODO(synk): HF BERT default activation is exact erf-GELU; tanh approximation used here
    # (identical approximation used in the reference, so the correctness check is consistent).
    c = 0.7978845608028654
    return 0.5 * x * (1.0 + jnp.tanh(c * (x + 0.044715 * x * x * x)))


def _softmax_last(x):
    x = x - jnp.max(x, axis=-1, keepdims=True)
    e = jnp.exp(x)
    return e / jnp.sum(e, axis=-1, keepdims=True)


# ---- fused Pallas kernel: all encoder layers + classifier ----------------------------
def fused_bert_kernel(x0_ref, bias_ref, sel_ref, clsw_ref, clsb_ref,
                      wqkv_ref, bqkv_ref, wo_ref, bo_ref, ln1g_ref, ln1b_ref,
                      w1_ref, b1_ref, w2_ref, b2_ref, ln2g_ref, ln2b_ref,
                      out_ref, x_scr):
    layer = pl.program_id(0)

    @pl.when(layer == 0)
    def _():
        x_scr[...] = x0_ref[...]                      # load embeddings once

    x = x_scr[...]                                    # (B*S, H), resident across layers
    bias = bias_ref[...]                              # (B*S, B*S) block-diag attn bias

    # Fused QKV projection: one (BS, H) @ (H, 3H) MXU pass.
    qkv = jnp.dot(x, wqkv_ref[0], preferred_element_type=jnp.float32) + bqkv_ref[0]

    wo = wo_ref[0]                                    # (H, H)
    attn = jnp.zeros((BS, HIDDEN), jnp.float32)
    for h in range(N_HEADS):                          # static unroll; no per-head concat
        q_sl = slice(h * HEAD_DIM, (h + 1) * HEAD_DIM)
        k_sl = slice(HIDDEN + h * HEAD_DIM, HIDDEN + (h + 1) * HEAD_DIM)
        v_sl = slice(2 * HIDDEN + h * HEAD_DIM, 2 * HIDDEN + (h + 1) * HEAD_DIM)
        qh, kh, vh = qkv[:, q_sl], qkv[:, k_sl], qkv[:, v_sl]
        s = jax.lax.dot_general(qh, kh, (((1,), (1,)), ((), ())),
                                preferred_element_type=jnp.float32) * SCALE + bias
        p = _softmax_last(s)
        ctx = jnp.dot(p, vh, preferred_element_type=jnp.float32)      # (B*S, D)
        attn = attn + jnp.dot(ctx, wo[q_sl, :], preferred_element_type=jnp.float32)

    h1 = _layer_norm(x + attn + bo_ref[0], ln1g_ref[0], ln1b_ref[0])

    ff = jnp.dot(h1, w1_ref[0], preferred_element_type=jnp.float32) + b1_ref[0]
    ff = _gelu(ff)
    ff = jnp.dot(ff, w2_ref[0], preferred_element_type=jnp.float32) + b2_ref[0]
    x_new = _layer_norm(h1 + ff, ln2g_ref[0], ln2b_ref[0])
    x_scr[...] = x_new                                # carry to next layer step

    @pl.when(layer == pl.num_programs(0) - 1)
    def _():
        # CLS pooling (one-hot selector picks row b*S of x_new) + Linear(H,1) + sigmoid.
        cls = jnp.dot(sel_ref[...], x_new, preferred_element_type=jnp.float32)   # (B, H)
        logits = jnp.sum(cls * clsw_ref[...], axis=-1, keepdims=True) + clsb_ref[...]
        out_ref[...] = jax.nn.sigmoid(logits)


# ---- wrapper: single pallas_call over the layer grid ---------------------------------
def bert_matching_forward(params, input_ids, attention_mask):
    B, S = input_ids.shape
    # Embedding gather + LayerNorm: glue, plain JAX (gather has no clean BlockSpec form here).
    x = (params["word_emb"][input_ids]
         + params["pos_emb"][jnp.arange(S)][None, :, :]
         + params["type_emb"][0][None, None, :])
    x = _layer_norm(x, params["emb_ln_g"], params["emb_ln_b"]).astype(jnp.float32)
    x_flat = x.reshape(B * S, HIDDEN)

    # Block-diagonal additive attention bias (computed once):
    #   -10000 for cross-sequence pairs and for padded keys -> exp underflows to ~0,
    #   matching per-sequence softmax with BERT's extended attention mask.
    mask_f = attention_mask.astype(jnp.float32).reshape(B * S)
    seq_ids = jnp.repeat(jnp.arange(B), S)
    same_seq = (seq_ids[:, None] == seq_ids[None, :]).astype(jnp.float32)
    attn_bias = (1.0 - same_seq * mask_f[None, :]) * (-10000.0)        # (B*S, B*S)

    # One-hot CLS selector: row b picks token b*S of the flattened activations.
    sel = jnp.zeros((B, B * S), jnp.float32).at[jnp.arange(B), jnp.arange(B) * S].set(1.0)

    # Stack per-layer weights along a leading layer dim -> one grid axis over layers.
    # Q/K/V weights and biases are fused into one (H, 3H) / (1, 3H) block per layer.
    wqkv = jnp.stack([jnp.concatenate([lp["wq"], lp["wk"], lp["wv"]], axis=1)
                      for lp in params["layers"]])                     # (L, H, 3H)
    bqkv = jnp.stack([jnp.concatenate([lp["bq"], lp["bk"], lp["bv"]], axis=1)
                      for lp in params["layers"]])                     # (L, 1, 3H)
    names = ["wo", "bo", "ln1_g", "ln1_b", "w1", "b1", "w2", "b2", "ln2_g", "ln2_b"]
    stacked = [wqkv, bqkv] + [jnp.stack([lp[n] for lp in params["layers"]]) for n in names]

    cls_w_row = params["cls_w"].reshape(1, HIDDEN)     # Linear(H,1) weight as a row for VPU reduction

    def const_spec(arr):
        n = arr.ndim
        return pl.BlockSpec(arr.shape, lambda l, _n=n: (0,) * _n)

    def layer_spec(arr):
        n = arr.ndim
        return pl.BlockSpec((1,) + arr.shape[1:], lambda l, _n=n: (l,) + (0,) * (_n - 1))

    in_specs = ([const_spec(x_flat), const_spec(attn_bias), const_spec(sel),
                 const_spec(cls_w_row), const_spec(params["cls_b"])]
                + [layer_spec(a) for a in stacked])

    return pl.pallas_call(
        fused_bert_kernel,
        out_shape=jax.ShapeDtypeStruct((B, 1), jnp.float32),
        grid=(N_LAYERS,),
        in_specs=in_specs,
        out_specs=pl.BlockSpec((B, 1), lambda l: (0, 0)),
        scratch_shapes=[pltpu.VMEM((B * S, HIDDEN), jnp.float32)],
        compiler_params=pltpu.CompilerParams(dimension_semantics=("arbitrary",)),
    )(x_flat, attn_bias, sel, cls_w_row, params["cls_b"], *stacked)


# ---- pure-JAX reference (for correctness check) --------------------------------------
def _encoder_layer_ref(x, mask_f, lp):
    B, S, H = x.shape
    q = (x @ lp["wq"] + lp["bq"]).reshape(B, S, N_HEADS, HEAD_DIM)
    k = (x @ lp["wk"] + lp["bk"]).reshape(B, S, N_HEADS, HEAD_DIM)
    v = (x @ lp["wv"] + lp["bv"]).reshape(B, S, N_HEADS, HEAD_DIM)
    s = jnp.einsum("bqhd,bkhd->bhqk", q, k) * SCALE
    s = s + (1.0 - mask_f)[:, None, None, :] * (-10000.0)
    p = _softmax_last(s)
    ctx = jnp.einsum("bhqk,bkhd->bqhd", p, v).reshape(B, S, H)
    h1 = _layer_norm(x + ctx @ lp["wo"] + lp["bo"], lp["ln1_g"], lp["ln1_b"])
    ff = _gelu(h1 @ lp["w1"] + lp["b1"]) @ lp["w2"] + lp["b2"]
    return _layer_norm(h1 + ff, lp["ln2_g"], lp["ln2_b"])


def bert_matching_forward_ref(params, input_ids, attention_mask):
    B, S = input_ids.shape
    x = (params["word_emb"][input_ids]
         + params["pos_emb"][jnp.arange(S)][None, :, :]
         + params["type_emb"][0][None, None, :])
    x = _layer_norm(x, params["emb_ln_g"], params["emb_ln_b"]).astype(jnp.float32)
    mask_f = attention_mask.astype(jnp.float32)
    for lp in params["layers"]:
        x = _encoder_layer_ref(x, mask_f, lp)
    logits = x[:, 0, :] @ params["cls_w"] + params["cls_b"]
    return jax.nn.sigmoid(logits)


# ---- deterministic parameter init ----------------------------------------------------
def init_params(key):
    def nrm(k, shape):
        return 0.02 * jax.random.normal(k, shape, dtype=jnp.float32)

    keys = iter(jax.random.split(key, 4 + 6 * N_LAYERS))
    params = {
        "word_emb": nrm(next(keys), (VOCAB, HIDDEN)),
        "pos_emb": nrm(next(keys), (MAX_POS, HIDDEN)),
        "type_emb": nrm(next(keys), (2, HIDDEN)),
        "emb_ln_g": jnp.ones((1, HIDDEN), jnp.float32),
        "emb_ln_b": jnp.zeros((1, HIDDEN), jnp.float32),
        "cls_w": nrm(next(keys), (HIDDEN, 1)),       # Linear(768,1) weight, stored (in,out)
        "cls_b": jnp.zeros((1, 1), jnp.float32),
        "layers": [],
    }
    for _ in range(N_LAYERS):
        params["layers"].append({
            "wq": nrm(next(keys), (HIDDEN, HIDDEN)),
            "bq": jnp.zeros((1, HIDDEN), jnp.float32),
            "wk": nrm(next(keys), (HIDDEN, HIDDEN)),
            "bk": jnp.zeros((1, HIDDEN), jnp.float32),
            "wv": nrm(next(keys), (HIDDEN, HIDDEN)),
            "bv": jnp.zeros((1, HIDDEN), jnp.float32),
            "wo": nrm(next(keys), (HIDDEN, HIDDEN)),
            "bo": jnp.zeros((1, HIDDEN), jnp.float32),
            "ln1_g": jnp.ones((1, HIDDEN), jnp.float32),
            "ln1_b": jnp.zeros((1, HIDDEN), jnp.float32),
            "w1": nrm(next(keys), (HIDDEN, INTERMEDIATE)),
            "b1": jnp.zeros((1, INTERMEDIATE), jnp.float32),
            "w2": nrm(next(keys), (INTERMEDIATE, HIDDEN)),
            "b2": jnp.zeros((1, HIDDEN), jnp.float32),
            "ln2_g": jnp.ones((1, HIDDEN), jnp.float32),
            "ln2_b": jnp.zeros((1, HIDDEN), jnp.float32),
        })
    return params


if __name__ == "__main__":
    key = jax.random.PRNGKey(0)
    pkey, ikey = jax.random.split(key)
    params = init_params(pkey)

    input_ids = jax.random.randint(ikey, (BATCH, SEQ), 0, VOCAB, dtype=jnp.int32)
    attention_mask = jnp.array(
        [[1] * SEQ, [1] * (SEQ - 2) + [0, 0]], dtype=jnp.int32)  # second seq has padding

    probs = bert_matching_forward(params, input_ids, attention_mask)
    probs = jax.block_until_ready(probs)

    ref = bert_matching_forward_ref(params, input_ids, attention_mask)
    assert probs.shape == (BATCH, 1), probs.shape
    assert bool(jnp.all(jnp.isfinite(probs)))
    assert bool(jnp.allclose(probs, ref, atol=1e-3)), (probs, ref)
    print("KERNEL_OK")
</pallas_src>

<mosaic_0001>
module attributes {stable_mosaic.version = 11 : i64} {
  func.func @fused_bert_kernel(%arg0: i32, %arg1: memref<16x128xf32, #tpu.memory_space<vmem>>, %arg2: memref<16x16xf32, #tpu.memory_space<vmem>>, %arg3: memref<2x16xf32, #tpu.memory_space<vmem>>, %arg4: memref<1x128xf32, #tpu.memory_space<vmem>>, %arg5: memref<1x1xf32, #tpu.memory_space<vmem>>, %arg6: memref<1x128x384xf32, #tpu.memory_space<vmem>>, %arg7: memref<1x1x384xf32, #tpu.memory_space<vmem>>, %arg8: memref<1x128x128xf32, #tpu.memory_space<vmem>>, %arg9: memref<1x1x128xf32, #tpu.memory_space<vmem>>, %arg10: memref<1x1x128xf32, #tpu.memory_space<vmem>>, %arg11: memref<1x1x128xf32, #tpu.memory_space<vmem>>, %arg12: memref<1x128x256xf32, #tpu.memory_space<vmem>>, %arg13: memref<1x1x256xf32, #tpu.memory_space<vmem>>, %arg14: memref<1x256x128xf32, #tpu.memory_space<vmem>>, %arg15: memref<1x1x128xf32, #tpu.memory_space<vmem>>, %arg16: memref<1x1x128xf32, #tpu.memory_space<vmem>>, %arg17: memref<1x1x128xf32, #tpu.memory_space<vmem>>, %arg18: memref<2x1xf32, #tpu.memory_space<vmem>>, %arg19: memref<16x128xf32, #tpu.memory_space<vmem>>) attributes {dimension_semantics = [#tpu.dimension_semantics<arbitrary>], iteration_bounds = array<i64: 2>, scalar_prefetch = 0 : i64, scratch_operands = 1 : i64, tpu.core_type = #tpu.core_type<tc>, window_params = [{pipeline_mode = #tpu.pipeline_mode<synchronous>, transform_indices = @transform_0, window_bounds = array<i64: 16, 128>}, {pipeline_mode = #tpu.pipeline_mode<synchronous>, transform_indices = @transform_1, window_bounds = array<i64: 16, 16>}, {pipeline_mode = #tpu.pipeline_mode<synchronous>, transform_indices = @transform_2, window_bounds = array<i64: 2, 16>}, {pipeline_mode = #tpu.pipeline_mode<synchronous>, transform_indices = @transform_3, window_bounds = array<i64: 1, 128>}, {pipeline_mode = #tpu.pipeline_mode<synchronous>, transform_indices = @transform_4, window_bounds = array<i64: 1, 1>}, {transform_indices = @transform_5, window_bounds = array<i64: 1, 128, 384>}, {transform_indices = @transform_6, window_bounds = array<i64: 1, 1, 384>}, {transform_indices = @transform_7, window_bounds = array<i64: 1, 128, 128>}, {transform_indices = @transform_8, window_bounds = array<i64: 1, 1, 128>}, {transform_indices = @transform_9, window_bounds = array<i64: 1, 1, 128>}, {transform_indices = @transform_10, window_bounds = array<i64: 1, 1, 128>}, {transform_indices = @transform_11, window_bounds = array<i64: 1, 128, 256>}, {transform_indices = @transform_12, window_bounds = array<i64: 1, 1, 256>}, {transform_indices = @transform_13, window_bounds = array<i64: 1, 256, 128>}, {transform_indices = @transform_14, window_bounds = array<i64: 1, 1, 128>}, {transform_indices = @transform_15, window_bounds = array<i64: 1, 1, 128>}, {transform_indices = @transform_16, window_bounds = array<i64: 1, 1, 128>}, {pipeline_mode = #tpu.pipeline_mode<synchronous>, transform_indices = @transform_17, window_bounds = array<i64: 2, 1>}]} {
    %c0_i32 = arith.constant 0 : i32
    %0 = arith.cmpi eq, %arg0, %c0_i32 : i32
    %1 = arith.extui %0 : i1 to i32
    %c0_i32_0 = arith.constant 0 : i32
    %2 = arith.cmpi ne, %1, %c0_i32_0 : i32
    scf.if %2 {
      %c0_72 = arith.constant 0 : index
      %c0_73 = arith.constant 0 : index
      %144 = vector.load %arg1[%c0_72, %c0_73] : memref<16x128xf32, #tpu.memory_space<vmem>>, vector<16x128xf32>
      %c0_74 = arith.constant 0 : index
      %c0_75 = arith.constant 0 : index
      %145 = vector.load %arg19[%c0_74, %c0_75] : memref<16x128xf32, #tpu.memory_space<vmem>>, vector<16x128xf32>
      tpu.vector_store %arg19[%c0_74, %c0_75], %144 {strides = array<i32>} : memref<16x128xf32, #tpu.memory_space<vmem>>, vector<16x128xf32>,
    } else {
    }
    %c0 = arith.constant 0 : index
    %c0_1 = arith.constant 0 : index
    %3 = vector.load %arg19[%c0, %c0_1] : memref<16x128xf32, #tpu.memory_space<vmem>>, vector<16x128xf32>
    %c0_2 = arith.constant 0 : index
    %c0_3 = arith.constant 0 : index
    %4 = vector.load %arg2[%c0_2, %c0_3] : memref<16x16xf32, #tpu.memory_space<vmem>>, vector<16x16xf32>
    %c0_4 = arith.constant 0 : index
    %c0_5 = arith.constant 0 : index
    %c0_6 = arith.constant 0 : index
    %5 = vector.load %arg6[%c0_4, %c0_5, %c0_6] : memref<1x128x384xf32, #tpu.memory_space<vmem>>, vector<1x128x384xf32>
    %6 = vector.shape_cast %5 : vector<1x128x384xf32> to vector<128x384xf32>
    %cst = arith.constant dense<0.000000e+00> : vector<16x384xf32>
    %7 = tpu.matmul %3, %6, %cst {dimension_numbers = #tpu.dot_dimension_numbers<[1], [0], [0], [1], [0, 0, 1, 1], [], []>} : vector<16x128xf32>, vector<128x384xf32>, vector<16x384xf32> -> vector<16x384xf32>
    %c0_7 = arith.constant 0 : index
    %c0_8 = arith.constant 0 : index
    %c0_9 = arith.constant 0 : index
    %8 = vector.load %arg7[%c0_7, %c0_8, %c0_9] : memref<1x1x384xf32, #tpu.memory_space<vmem>>, vector<1x1x384xf32>
    %9 = vector.shape_cast %8 : vector<1x1x384xf32> to vector<1x384xf32>
    %10 = vector.broadcast %9 : vector<1x384xf32> to vector<16x384xf32>
    %11 = arith.addf %7, %10 : vector<16x384xf32>
    %c0_10 = arith.constant 0 : index
    %c0_11 = arith.constant 0 : index
    %c0_12 = arith.constant 0 : index
    %12 = vector.load %arg8[%c0_10, %c0_11, %c0_12] : memref<1x128x128xf32, #tpu.memory_space<vmem>>, vector<1x128x128xf32>
    %13 = vector.shape_cast %12 : vector<1x128x128xf32> to vector<128x128xf32>
    %cst_13 = arith.constant 0.000000e+00 : f32
    %14 = vector.broadcast %cst_13 : f32 to vector<16x128xf32>
    %15 = vector.extract_strided_slice %11 {offsets = [0, 0], sizes = [16, 64], strides = [1, 1]} : vector<16x384xf32> to vector<16x64xf32>
    %16 = vector.extract_strided_slice %11 {offsets = [0, 128], sizes = [16, 64], strides = [1, 1]} : vector<16x384xf32> to vector<16x64xf32>
    %17 = vector.extract_strided_slice %11 {offsets = [0, 256], sizes = [16, 64], strides = [1, 1]} : vector<16x384xf32> to vector<16x64xf32>
    %cst_14 = arith.constant dense<0.000000e+00> : vector<16x16xf32>
    %18 = tpu.matmul %15, %16, %cst_14 {dimension_numbers = #tpu.dot_dimension_numbers<[1], [1], [0], [0], [0, 0, 1, 0], [], []>} : vector<16x64xf32>, vector<16x64xf32>, vector<16x16xf32> -> vector<16x16xf32>
    %cst_15 = arith.constant 1.250000e-01 : f32
    %19 = vector.broadcast %cst_15 : f32 to vector<16x16xf32>
    %20 = arith.mulf %18, %19 : vector<16x16xf32>
    %21 = arith.addf %20, %4 : vector<16x16xf32>
    %cst_16 = arith.constant dense<0xFF800000> : vector<16xf32>
    %22 = vector.multi_reduction <maximumf>, %21, %cst_16 [1] : vector<16x16xf32> to vector<16xf32>
    %23 = vector.shape_cast %22 : vector<16xf32> to vector<16x1xf32>
    %24 = vector.broadcast %23 : vector<16x1xf32> to vector<16x16xf32>
    %25 = arith.subf %21, %24 : vector<16x16xf32>
    %26 = math.exp %25 : vector<16x16xf32>
    %cst_17 = arith.constant dense<0.000000e+00> : vector<16xf32>
    %27 = vector.multi_reduction <add>, %26, %cst_17 [1] : vector<16x16xf32> to vector<16xf32>
    %28 = vector.shape_cast %27 : vector<16xf32> to vector<16x1xf32>
    %29 = vector.broadcast %28 : vector<16x1xf32> to vector<16x16xf32>
    %30 = arith.divf %26, %29 : vector<16x16xf32>
    %cst_18 = arith.constant dense<0.000000e+00> : vector<16x64xf32>
    %31 = tpu.matmul %30, %17, %cst_18 {dimension_numbers = #tpu.dot_dimension_numbers<[1], [0], [0], [1], [0, 0, 1, 1], [], []>} : vector<16x16xf32>, vector<16x64xf32>, vector<16x64xf32> -> vector<16x64xf32>
    %32 = vector.extract_strided_slice %13 {offsets = [0, 0], sizes = [64, 128], strides = [1, 1]} : vector<128x128xf32> to vector<64x128xf32>
    %cst_19 = arith.constant dense<0.000000e+00> : vector<16x128xf32>
    %33 = tpu.matmul %31, %32, %cst_19 {dimension_numbers = #tpu.dot_dimension_numbers<[1], [0], [0], [1], [0, 0, 1, 1], [], []>} : vector<16x64xf32>, vector<64x128xf32>, vector<16x128xf32> -> vector<16x128xf32>
    %34 = arith.addf %14, %33 : vector<16x128xf32>
    %35 = vector.extract_strided_slice %11 {offsets = [0, 64], sizes = [16, 64], strides = [1, 1]} : vector<16x384xf32> to vector<16x64xf32>
    %36 = vector.extract_strided_slice %11 {offsets = [0, 192], sizes = [16, 64], strides = [1, 1]} : vector<16x384xf32> to vector<16x64xf32>
    %37 = vector.extract_strided_slice %11 {offsets = [0, 320], sizes = [16, 64], strides = [1, 1]} : vector<16x384xf32> to vector<16x64xf32>
    %cst_20 = arith.constant dense<0.000000e+00> : vector<16x16xf32>
    %38 = tpu.matmul %35, %36, %cst_20 {dimension_numbers = #tpu.dot_dimension_numbers<[1], [1], [0], [0], [0, 0, 1, 0], [], []>} : vector<16x64xf32>, vector<16x64xf32>, vector<16x16xf32> -> vector<16x16xf32>
    %cst_21 = arith.constant 1.250000e-01 : f32
    %39 = vector.broadcast %cst_21 : f32 to vector<16x16xf32>
    %40 = arith.mulf %38, %39 : vector<16x16xf32>
    %41 = arith.addf %40, %4 : vector<16x16xf32>
    %cst_22 = arith.constant dense<0xFF800000> : vector<16xf32>
    %42 = vector.multi_reduction <maximumf>, %41, %cst_22 [1] : vector<16x16xf32> to vector<16xf32>
    %43 = vector.shape_cast %42 : vector<16xf32> to vector<16x1xf32>
    %44 = vector.broadcast %43 : vector<16x1xf32> to vector<16x16xf32>
    %45 = arith.subf %41, %44 : vector<16x16xf32>
    %46 = math.exp %45 : vector<16x16xf32>
    %cst_23 = arith.constant dense<0.000000e+00> : vector<16xf32>
    %47 = vector.multi_reduction <add>, %46, %cst_23 [1] : vector<16x16xf32> to vector<16xf32>
    %48 = vector.shape_cast %47 : vector<16xf32> to vector<16x1xf32>
    %49 = vector.broadcast %48 : vector<16x1xf32> to vector<16x16xf32>
    %50 = arith.divf %46, %49 : vector<16x16xf32>
    %cst_24 = arith.constant dense<0.000000e+00> : vector<16x64xf32>
    %51 = tpu.matmul %50, %37, %cst_24 {dimension_numbers = #tpu.dot_dimension_numbers<[1], [0], [0], [1], [0, 0, 1, 1], [], []>} : vector<16x16xf32>, vector<16x64xf32>, vector<16x64xf32> -> vector<16x64xf32>
    %52 = vector.extract_strided_slice %13 {offsets = [64, 0], sizes = [64, 128], strides = [1, 1]} : vector<128x128xf32> to vector<64x128xf32>
    %cst_25 = arith.constant dense<0.000000e+00> : vector<16x128xf32>
    %53 = tpu.matmul %51, %52, %cst_25 {dimension_numbers = #tpu.dot_dimension_numbers<[1], [0], [0], [1], [0, 0, 1, 1], [], []>} : vector<16x64xf32>, vector<64x128xf32>, vector<16x128xf32> -> vector<16x128xf32>
    %54 = arith.addf %34, %53 : vector<16x128xf32>
    %55 = arith.addf %3, %54 : vector<16x128xf32>
    %c0_26 = arith.constant 0 : index
    %c0_27 = arith.constant 0 : index
    %c0_28 = arith.constant 0 : index
    %56 = vector.load %arg9[%c0_26, %c0_27, %c0_28] : memref<1x1x128xf32, #tpu.memory_space<vmem>>, vector<1x1x128xf32>
    %57 = vector.shape_cast %56 : vector<1x1x128xf32> to vector<1x128xf32>
    %58 = vector.broadcast %57 : vector<1x128xf32> to vector<16x128xf32>
    %59 = arith.addf %55, %58 : vector<16x128xf32>
    %c0_29 = arith.constant 0 : index
    %c0_30 = arith.constant 0 : index
    %c0_31 = arith.constant 0 : index
    %60 = vector.load %arg10[%c0_29, %c0_30, %c0_31] : memref<1x1x128xf32, #tpu.memory_space<vmem>>, vector<1x1x128xf32>
    %61 = vector.shape_cast %60 : vector<1x1x128xf32> to vector<1x128xf32>
    %c0_32 = arith.constant 0 : index
    %c0_33 = arith.constant 0 : index
    %c0_34 = arith.constant 0 : index
    %62 = vector.load %arg11[%c0_32, %c0_33, %c0_34] : memref<1x1x128xf32, #tpu.memory_space<vmem>>, vector<1x1x128xf32>
    %63 = vector.shape_cast %62 : vector<1x1x128xf32> to vector<1x128xf32>
    %cst_35 = arith.constant dense<0.000000e+00> : vector<16xf32>
    %64 = vector.multi_reduction <add>, %59, %cst_35 [1] : vector<16x128xf32> to vector<16xf32>
    %65 = vector.shape_cast %64 : vector<16xf32> to vector<16x1xf32>
    %cst_36 = arith.constant 1.280000e+02 : f32
    %66 = vector.broadcast %cst_36 : f32 to vector<16x1xf32>
    %67 = arith.divf %65, %66 : vector<16x1xf32>
    %68 = vector.broadcast %67 : vector<16x1xf32> to vector<16x128xf32>
    %69 = arith.subf %59, %68 : vector<16x128xf32>
    %70 = arith.mulf %69, %69 : vector<16x128xf32>
    %cst_37 = arith.constant dense<0.000000e+00> : vector<16xf32>
    %71 = vector.multi_reduction <add>, %70, %cst_37 [1] : vector<16x128xf32> to vector<16xf32>
    %72 = vector.shape_cast %71 : vector<16xf32> to vector<16x1xf32>
    %cst_38 = arith.constant 1.280000e+02 : f32
    %73 = vector.broadcast %cst_38 : f32 to vector<16x1xf32>
    %74 = arith.divf %72, %73 : vector<16x1xf32>
    %75 = vector.broadcast %67 : vector<16x1xf32> to vector<16x128xf32>
    %76 = arith.subf %59, %75 : vector<16x128xf32>
    %cst_39 = arith.constant 9.99999996E-13 : f32
    %77 = vector.broadcast %cst_39 : f32 to vector<16x1xf32>
    %78 = arith.addf %74, %77 : vector<16x1xf32>
    %79 = math.rsqrt %78 : vector<16x1xf32>
    %80 = vector.broadcast %79 : vector<16x1xf32> to vector<16x128xf32>
    %81 = arith.mulf %76, %80 : vector<16x128xf32>
    %82 = vector.broadcast %61 : vector<1x128xf32> to vector<16x128xf32>
    %83 = arith.mulf %81, %82 : vector<16x128xf32>
    %84 = vector.broadcast %63 : vector<1x128xf32> to vector<16x128xf32>
    %85 = arith.addf %83, %84 : vector<16x128xf32>
    %c0_40 = arith.constant 0 : index
    %c0_41 = arith.constant 0 : index
    %c0_42 = arith.constant 0 : index
    %86 = vector.load %arg12[%c0_40, %c0_41, %c0_42] : memref<1x128x256xf32, #tpu.memory_space<vmem>>, vector<1x128x256xf32>
    %87 = vector.shape_cast %86 : vector<1x128x256xf32> to vector<128x256xf32>
    %cst_43 = arith.constant dense<0.000000e+00> : vector<16x256xf32>
    %88 = tpu.matmul %85, %87, %cst_43 {dimension_numbers = #tpu.dot_dimension_numbers<[1], [0], [0], [1], [0, 0, 1, 1], [], []>} : vector<16x128xf32>, vector<128x256xf32>, vector<16x256xf32> -> vector<16x256xf32>
    %c0_44 = arith.constant 0 : index
    %c0_45 = arith.constant 0 : index
    %c0_46 = arith.constant 0 : index
    %89 = vector.load %arg13[%c0_44, %c0_45, %c0_46] : memref<1x1x256xf32, #tpu.memory_space<vmem>>, vector<1x1x256xf32>
    %90 = vector.shape_cast %89 : vector<1x1x256xf32> to vector<1x256xf32>
    %91 = vector.broadcast %90 : vector<1x256xf32> to vector<16x256xf32>
    %92 = arith.addf %88, %91 : vector<16x256xf32>
    %cst_47 = arith.constant 5.000000e-01 : f32
    %93 = vector.broadcast %cst_47 : f32 to vector<16x256xf32>
    %94 = arith.mulf %93, %92 : vector<16x256xf32>
    %cst_48 = arith.constant 4.471500e-02 : f32
    %95 = vector.broadcast %cst_48 : f32 to vector<16x256xf32>
    %96 = arith.mulf %95, %92 : vector<16x256xf32>
    %97 = arith.mulf %96, %92 : vector<16x256xf32>
    %98 = arith.mulf %97, %92 : vector<16x256xf32>
    %99 = arith.addf %92, %98 : vector<16x256xf32>
    %cst_49 = arith.constant 0.797884583 : f32
    %100 = vector.broadcast %cst_49 : f32 to vector<16x256xf32>
    %101 = arith.mulf %100, %99 : vector<16x256xf32>
    %102 = math.tanh %101 : vector<16x256xf32>
    %cst_50 = arith.constant 1.000000e+00 : f32
    %103 = vector.broadcast %cst_50 : f32 to vector<16x256xf32>
    %104 = arith.addf %103, %102 : vector<16x256xf32>
    %105 = arith.mulf %94, %104 : vector<16x256xf32>
    %c0_51 = arith.constant 0 : index
    %c0_52 = arith.constant 0 : index
    %c0_53 = arith.constant 0 : index
    %106 = vector.load %arg14[%c0_51, %c0_52, %c0_53] : memref<1x256x128xf32, #tpu.memory_space<vmem>>, vector<1x256x128xf32>
    %107 = vector.shape_cast %106 : vector<1x256x128xf32> to vector<256x128xf32>
    %cst_54 = arith.constant dense<0.000000e+00> : vector<16x128xf32>
    %108 = tpu.matmul %105, %107, %cst_54 {dimension_numbers = #tpu.dot_dimension_numbers<[1], [0], [0], [1], [0, 0, 1, 1], [], []>} : vector<16x256xf32>, vector<256x128xf32>, vector<16x128xf32> -> vector<16x128xf32>
    %c0_55 = arith.constant 0 : index
    %c0_56 = arith.constant 0 : index
    %c0_57 = arith.constant 0 : index
    %109 = vector.load %arg15[%c0_55, %c0_56, %c0_57] : memref<1x1x128xf32, #tpu.memory_space<vmem>>, vector<1x1x128xf32>
    %110 = vector.shape_cast %109 : vector<1x1x128xf32> to vector<1x128xf32>
    %111 = vector.broadcast %110 : vector<1x128xf32> to vector<16x128xf32>
    %112 = arith.addf %108, %111 : vector<16x128xf32>
    %113 = arith.addf %85, %112 : vector<16x128xf32>
    %c0_58 = arith.constant 0 : index
    %c0_59 = arith.constant 0 : index
    %c0_60 = arith.constant 0 : index
    %114 = vector.load %arg16[%c0_58, %c0_59, %c0_60] : memref<1x1x128xf32, #tpu.memory_space<vmem>>, vector<1x1x128xf32>
    %115 = vector.shape_cast %114 : vector<1x1x128xf32> to vector<1x128xf32>
    %c0_61 = arith.constant 0 : index
    %c0_62 = arith.constant 0 : index
    %c0_63 = arith.constant 0 : index
    %116 = vector.load %arg17[%c0_61, %c0_62, %c0_63] : memref<1x1x128xf32, #tpu.memory_space<vmem>>, vector<1x1x128xf32>
    %117 = vector.shape_cast %116 : vector<1x1x128xf32> to vector<1x128xf32>
    %cst_64 = arith.constant dense<0.000000e+00> : vector<16xf32>
    %118 = vector.multi_reduction <add>, %113, %cst_64 [1] : vector<16x128xf32> to vector<16xf32>
    %119 = vector.shape_cast %118 : vector<16xf32> to vector<16x1xf32>
    %cst_65 = arith.constant 1.280000e+02 : f32
    %120 = vector.broadcast %cst_65 : f32 to vector<16x1xf32>
    %121 = arith.divf %119, %120 : vector<16x1xf32>
    %122 = vector.broadcast %121 : vector<16x1xf32> to vector<16x128xf32>
    %123 = arith.subf %113, %122 : vector<16x128xf32>
    %124 = arith.mulf %123, %123 : vector<16x128xf32>
    %cst_66 = arith.constant dense<0.000000e+00> : vector<16xf32>
    %125 = vector.multi_reduction <add>, %124, %cst_66 [1] : vector<16x128xf32> to vector<16xf32>
    %126 = vector.shape_cast %125 : vector<16xf32> to vector<16x1xf32>
    %cst_67 = arith.constant 1.280000e+02 : f32
    %127 = vector.broadcast %cst_67 : f32 to vector<16x1xf32>
    %128 = arith.divf %126, %127 : vector<16x1xf32>
    %129 = vector.broadcast %121 : vector<16x1xf32> to vector<16x128xf32>
    %130 = arith.subf %113, %129 : vector<16x128xf32>
    %cst_68 = arith.constant 9.99999996E-13 : f32
    %131 = vector.broadcast %cst_68 : f32 to vector<16x1xf32>
    %132 = arith.addf %128, %131 : vector<16x1xf32>
    %133 = math.rsqrt %132 : vector<16x1xf32>
    %134 = vector.broadcast %133 : vector<16x1xf32> to vector<16x128xf32>
    %135 = arith.mulf %130, %134 : vector<16x128xf32>
    %136 = vector.broadcast %115 : vector<1x128xf32> to vector<16x128xf32>
    %137 = arith.mulf %135, %136 : vector<16x128xf32>
    %138 = vector.broadcast %117 : vector<1x128xf32> to vector<16x128xf32>
    %139 = arith.addf %137, %138 : vector<16x128xf32>
    %c0_69 = arith.constant 0 : index
    %c0_70 = arith.constant 0 : index
    %140 = vector.load %arg19[%c0_69, %c0_70] : memref<16x128xf32, #tpu.memory_space<vmem>>, vector<16x128xf32>
    tpu.vector_store %arg19[%c0_69, %c0_70], %139 {strides = array<i32>} : memref<16x128xf32, #tpu.memory_space<vmem>>, vector<16x128xf32>,
    %c1_i32 = arith.constant 1 : i32
    %141 = arith.cmpi eq, %arg0, %c1_i32 : i32
    %142 = arith.extui %141 : i1 to i32
    %c0_i32_71 = arith.constant 0 : i32
    %143 = arith.cmpi ne, %142, %c0_i32_71 : i32
    scf.if %143 {
      %c0_72 = arith.constant 0 : index
      %c0_73 = arith.constant 0 : index
      %144 = vector.load %arg3[%c0_72, %c0_73] : memref<2x16xf32, #tpu.memory_space<vmem>>, vector<2x16xf32>
      %cst_74 = arith.constant dense<0.000000e+00> : vector<2x128xf32>
      %145 = tpu.matmul %144, %139, %cst_74 {dimension_numbers = #tpu.dot_dimension_numbers<[1], [0], [0], [1], [0, 0, 1, 1], [], []>} : vector<2x16xf32>, vector<16x128xf32>, vector<2x128xf32> -> vector<2x128xf32>
      %c0_75 = arith.constant 0 : index
      %c0_76 = arith.constant 0 : index
      %146 = vector.load %arg4[%c0_75, %c0_76] : memref<1x128xf32, #tpu.memory_space<vmem>>, vector<1x128xf32>
      %147 = vector.broadcast %146 : vector<1x128xf32> to vector<2x128xf32>
      %148 = arith.mulf %145, %147 : vector<2x128xf32>
      %cst_77 = arith.constant dense<0.000000e+00> : vector<2xf32>
      %149 = vector.multi_reduction <add>, %148, %cst_77 [1] : vector<2x128xf32> to vector<2xf32>
      %150 = vector.shape_cast %149 : vector<2xf32> to vector<2x1xf32>
      %c0_78 = arith.constant 0 : index
      %c0_79 = arith.constant 0 : index
      %151 = vector.load %arg5[%c0_78, %c0_79] : memref<1x1xf32, #tpu.memory_space<vmem>>, vector<1x1xf32>
      %152 = vector.broadcast %151 : vector<1x1xf32> to vector<2x1xf32>
      %153 = arith.addf %150, %152 : vector<2x1xf32>
      %154 = arith.negf %153 : vector<2x1xf32>
      %155 = math.exp %154 : vector<2x1xf32>
      %cst_80 = arith.constant 1.000000e+00 : f32
      %156 = vector.broadcast %cst_80 : f32 to vector<2x1xf32>
      %157 = arith.addf %156, %155 : vector<2x1xf32>
      %158 = arith.divf %156, %157 : vector<2x1xf32>
      %c0_81 = arith.constant 0 : index
      %c0_82 = arith.constant 0 : index
      %159 = vector.load %arg18[%c0_81, %c0_82] : memref<2x1xf32, #tpu.memory_space<vmem>>, vector<2x1xf32>
      tpu.vector_store %arg18[%c0_81, %c0_82], %158 {strides = array<i32>} : memref<2x1xf32, #tpu.memory_space<vmem>>, vector<2x1xf32>,
    } else {
    }
    return
  }
  func.func @transform_0(%arg0: i32) -> (i32, i32) {
    %c0_i32 = arith.constant 0 : i32
    %c0_i32_0 = arith.constant 0 : i32
    %c0_i32_1 = arith.constant 0 : i32
    return %c0_i32, %c0_i32_0 : i32, i32
  }
  func.func @transform_1(%arg0: i32) -> (i32, i32) {
    %c0_i32 = arith.constant 0 : i32
    %c0_i32_0 = arith.constant 0 : i32
    %c0_i32_1 = arith.constant 0 : i32
    return %c0_i32, %c0_i32_0 : i32, i32
  }
  func.func @transform_2(%arg0: i32) -> (i32, i32) {
    %c0_i32 = arith.constant 0 : i32
    %c0_i32_0 = arith.constant 0 : i32
    %c0_i32_1 = arith.constant 0 : i32
    return %c0_i32, %c0_i32_0 : i32, i32
  }
  func.func @transform_3(%arg0: i32) -> (i32, i32) {
    %c0_i32 = arith.constant 0 : i32
    %c0_i32_0 = arith.constant 0 : i32
    %c0_i32_1 = arith.constant 0 : i32
    return %c0_i32, %c0_i32_0 : i32, i32
  }
  func.func @transform_4(%arg0: i32) -> (i32, i32) {
    %c0_i32 = arith.constant 0 : i32
    %c0_i32_0 = arith.constant 0 : i32
    %c0_i32_1 = arith.constant 0 : i32
    return %c0_i32, %c0_i32_0 : i32, i32
  }
  func.func @transform_5(%arg0: i32) -> (i32, i32, i32) {
    %c0_i32 = arith.constant 0 : i32
    %c0_i32_0 = arith.constant 0 : i32
    %c0_i32_1 = arith.constant 0 : i32
    return %arg0, %c0_i32, %c0_i32_0 : i32, i32, i32
  }
  func.func @transform_6(%arg0: i32) -> (i32, i32, i32) {
    %c0_i32 = arith.constant 0 : i32
    %c0_i32_0 = arith.constant 0 : i32
    %c0_i32_1 = arith.constant 0 : i32
    return %arg0, %c0_i32, %c0_i32_0 : i32, i32, i32
  }
  func.func @transform_7(%arg0: i32) -> (i32, i32, i32) {
    %c0_i32 = arith.constant 0 : i32
    %c0_i32_0 = arith.constant 0 : i32
    %c0_i32_1 = arith.constant 0 : i32
    return %arg0, %c0_i32, %c0_i32_0 : i32, i32, i32
  }
  func.func @transform_8(%arg0: i32) -> (i32, i32, i32) {
    %c0_i32 = arith.constant 0 : i32
    %c0_i32_0 = arith.constant 0 : i32
    %c0_i32_1 = arith.constant 0 : i32
    return %arg0, %c0_i32, %c0_i32_0 : i32, i32, i32
  }
  func.func @transform_9(%arg0: i32) -> (i32, i32, i32) {
    %c0_i32 = arith.constant 0 : i32
    %c0_i32_0 = arith.constant 0 : i32
    %c0_i32_1 = arith.constant 0 : i32
    return %arg0, %c0_i32, %c0_i32_0 : i32, i32, i32
  }
  func.func @transform_10(%arg0: i32) -> (i32, i32, i32) {
    %c0_i32 = arith.constant 0 : i32
    %c0_i32_0 = arith.constant 0 : i32
    %c0_i32_1 = arith.constant 0 : i32
    return %arg0, %c0_i32, %c0_i32_0 : i32, i32, i32
  }
  func.func @transform_11(%arg0: i32) -> (i32, i32, i32) {
    %c0_i32 = arith.constant 0 : i32
    %c0_i32_0 = arith.constant 0 : i32
    %c0_i32_1 = arith.constant 0 : i32
    return %arg0, %c0_i32, %c0_i32_0 : i32, i32, i32
  }
  func.func @transform_12(%arg0: i32) -> (i32, i32, i32) {
    %c0_i32 = arith.constant 0 : i32
    %c0_i32_0 = arith.constant 0 : i32
    %c0_i32_1 = arith.constant 0 : i32
    return %arg0, %c0_i32, %c0_i32_0 : i32, i32, i32
  }
  func.func @transform_13(%arg0: i32) -> (i32, i32, i32) {
    %c0_i32 = arith.constant 0 : i32
    %c0_i32_0 = arith.constant 0 : i32
    %c0_i32_1 = arith.constant 0 : i32
    return %arg0, %c0_i32, %c0_i32_0 : i32, i32, i32
  }
  func.func @transform_14(%arg0: i32) -> (i32, i32, i32) {
    %c0_i32 = arith.constant 0 : i32
    %c0_i32_0 = arith.constant 0 : i32
    %c0_i32_1 = arith.constant 0 : i32
    return %arg0, %c0_i32, %c0_i32_0 : i32, i32, i32
  }
  func.func @transform_15(%arg0: i32) -> (i32, i32, i32) {
    %c0_i32 = arith.constant 0 : i32
    %c0_i32_0 = arith.constant 0 : i32
    %c0_i32_1 = arith.constant 0 : i32
    return %arg0, %c0_i32, %c0_i32_0 : i32, i32, i32
  }
  func.func @transform_16(%arg0: i32) -> (i32, i32, i32) {
    %c0_i32 = arith.constant 0 : i32
    %c0_i32_0 = arith.constant 0 : i32
    %c0_i32_1 = arith.constant 0 : i32
    return %arg0, %c0_i32, %c0_i32_0 : i32, i32, i32
  }
  func.func @transform_17(%arg0: i32) -> (i32, i32) {
    %c0_i32 = arith.constant 0 : i32
    %c0_i32_0 = arith.constant 0 : i32
    %c0_i32_1 = arith.constant 0 : i32
    return %c0_i32, %c0_i32_0 : i32, i32
  }
}

</mosaic_0001>

<bundles_post_ra>
// kernel: tpu_custom_call.1
= control target key start
LH: loop header
LB: loop body
LE: loop exit
PB: predicated region body
PF: predicated region fallthrough
CT: control target
= control target key end

     0   :  { %s3971_s0 = inlined_call_operand.hbm [shape: f32[16,128], index: 0, kind: input, shape index: {}]   ;;  %s3972_s1 = inlined_call_operand.hbm [shape: f32[16,16], index: 1, kind: input, shape index: {}]   ;;  %s3973_s2 = inlined_call_operand.hbm [shape: f32[2,16], index: 2, kind: input, shape index: {}]   ;;  %s3974_s3 = inlined_call_operand.hbm [shape: f32[1,128], index: 3, kind: input, shape index: {}]   ;;  %s3975_s4 = inlined_call_operand.<no memory space> [shape: f32[1,1], index: 4, kind: input, shape index: {}]   ;;  %s3976_s5 = inlined_call_operand.hbm [shape: f32[2,128,384], index: 5, kind: input, shape index: {}]   ;;  %s3977_s6 = inlined_call_operand.vmem [shape: f32[2,1,384], index: 6, kind: input, shape index: {}]   ;;  %s3978_s7 = inlined_call_operand.hbm [shape: f32[2,128,128], index: 7, kind: input, shape index: {}]   ;;  %s3979_s8 = inlined_call_operand.vmem [shape: f32[2,1,128], index: 8, kind: input, shape index: {}]   ;;  %s3980_s9 = inlined_call_operand.vmem [shape: f32[2,1,128], index: 9, kind: input, shape index: {}]   ;;  %s3981_s10 = inlined_call_operand.vmem [shape: f32[2,1,128], index: 10, kind: input, shape index: {}]   ;;  %s3982_s11 = inlined_call_operand.hbm [shape: f32[2,128,256], index: 11, kind: input, shape index: {}]   ;;  %s3983_s12 = inlined_call_operand.vmem [shape: f32[2,1,256], index: 12, kind: input, shape index: {}]   ;;  %s3984_s13 = inlined_call_operand.hbm [shape: f32[2,256,128], index: 13, kind: input, shape index: {}]   ;;  %s3985_s14 = inlined_call_operand.vmem [shape: f32[2,1,128], index: 14, kind: input, shape index: {}]   ;;  %s3986_s15 = inlined_call_operand.vmem [shape: f32[2,1,128], index: 15, kind: input, shape index: {}]   ;;  %s3987_s16 = inlined_call_operand.vmem [shape: f32[2,1,128], index: 16, kind: input, shape index: {}]   ;;  %s3988_s17 = inlined_call_operand.vmem [shape: f32[2,1], index: 17, kind: output, shape index: {}]  }
   0x1   :  { %4013 = sst [smem:[#allocation22_spill]] %s3971_s0  ;;  %v22_v0 = vstv %s3975_s4 }
   0x2   :  { %4014 = sst [smem:[#allocation23_spill]] %s3972_s1  ;;  %23 = vst [vmem:[#allocation3] sm:$0x1] %v22_v0 }
   0x3   :  { %4015 = sst [smem:[#allocation24_spill]] %s3976_s5 }
   0x4   :  { %4016 = sst [smem:[#allocation25_spill]] %s3977_s6 }
   0x5   :  { %4017 = sst [smem:[#allocation26_spill]] %s3978_s7 }
   0x6   :  { %4018 = sst [smem:[#allocation27_spill]] %s3979_s8 }
   0x7   :  { %4019 = sst [smem:[#allocation28_spill]] %s3980_s9 }
   0x8   :  { %4020 = sst [smem:[#allocation29_spill]] %s3981_s10 }
   0x9   :  { %4021 = sst [smem:[#allocation30_spill]] %s3982_s11 }
   0xa   :  { %4022 = sst [smem:[#allocation31_spill]] %s3983_s12 }
   0xb   :  { %4023 = sst [smem:[#allocation32_spill]] %s3985_s14 }
   0xc   :  { %4024 = sst [smem:[#allocation33_spill]] %s3986_s15 }
   0xd   :  { %4025 = sst [smem:[#allocation34_spill]] %s3987_s16 }
   0xe   :  { %4026 = sst [smem:[#allocation35_spill]] %s3988_s17 }
   0xf   :  { %24 = vsyncpa [#allocation5], 0 }
  0x10   :  { %25 = vsyncpa [#allocation7], 0 }
  0x11   :  { %26 = vsyncpa [#allocation10], 0  ;;  %s3329_s26 = smov 0   ;;  %s3331_s27 = smov 0  }
  0x12   :  { %s3333_s28 = smov 0   ;;  %s3335_s29 = smov 0  }
  0x13 LB: > { %4027 = sst [smem:[#allocation19_spill]] %s3211_s28  ;;  %s3348_s4 = sadd.s32 4294967295, %s3215_s29   ;;  %s3215_s29 = sphi %s3335_s29, %s4079_s29   ;;  %s3211_s28 = sphi %s3333_s28, %s4084_s28   ;;  %s3207_s27 = sphi %s3331_s27, %s4083_s27   ;;  %s3203_s26 = sphi %s3329_s26, %s4082_s26  }
  0x14   : > { %p157_p0 = scmp.ne.s32.totalorder %s3207_s27, %s3203_s26  ;;  %p3991_p1 = scmp.eq.s32.totalorder %s3348_s4, 0 }
  0x15   : > { %p2335_p2 = scmp.ge.s32.totalorder %s3215_s29, 1  ;;  %p475_p3 = scmp.lt.s32.totalorder %s3215_s29, 3 }
  0x16   : > { %p3357_p5 = por %p3991_p1, %p157_p0  ;;  %s3217_s18 = smov [#allocation4]  }
  0x17   : > { %p3361_p6 = pnand %p2335_p2, %p475_p3  ;;  %s487_s19 = sshll.u32 %s3217_s18, 4  ;;  %s488_s19 = int_to_ptr.vmem [resolvable:$true] %s487_s19 }
  0x18   : > { %s4028_s0 = scalar_select %p3357_p5, 1, 0 }
  0x19   : > { %s4029_s30 = scalar_select %p3361_p6, 1, 0 }
  0x1a   : > { %p2809_p7 = pneg %p3361_p6  ;;  %s3374_s20 = sadd.s32 1, %s3215_s29  }
  0x1b   : > { %4031 = sst [smem:[#allocation20_spill]] %s3374_s20  ;;  %s144_s21 = sadd.s32 1, %s3211_s28 }
  0x1c   : > { %p3369_p8 = pnand %p2809_p7, %p3991_p1  ;;  %s141_s22 = ssub.s32 %s3215_s29, %s3374_s20 }
  0x1d   : > { %s4032_s25 = sld [smem:[#allocation22_spill]] }
  0x1e   : > { %s4030_s1 = scalar_select %p3369_p8, 1, 0 }
  0x1f   : > { %p3387_p10 = pneg %p3369_p8 }
  0x21   : > { %s4033_s16 = scalar_select %p3387_p10, 1, 0 }
  0x23   : > { %s2937_s26 = scalar_lea.hbm %s4032_s25, 256 }
  0x24   : > { %p2938_p9 = scmp.ne.s32.totalorder %s4032_s25, %s2937_s26  ;;  %p2944_p13 = scmp.lt.u32.totalorder %s2937_s26, %s4032_s25 }
  0x26   : > { %p2940_p11 = pnand %p3387_p10, %p2938_p9 }
  0x28   : > { %p2941_p12 = pneg %p2940_p11 }
  0x2a   : > { %p2946_p0 = pnand %p2944_p13, %p2941_p12 }
  0x2c   : > { %2949 = shalt.err (!%p2946_p0)
}
  0x2d   : > { %s2950_s23 = scalar_lea.vmem %s488_s19, 256  ;;  %p2958_p4 = scmp.lt.s32.totalorder %s488_s19, %s488_s19 }
  0x2e   : > { %p2951_p2 = scmp.ne.s32.totalorder %s488_s19, %s2950_s23  ;;  %p2959_p1 = scmp.lt.s32.totalorder %s2950_s23, %s2950_s23 }
  0x30   : > { %p2953_p3 = pnand %p2951_p2, %p3387_p10  ;;  %p2960_p5 = por %p2959_p1, %p2958_p4 }
  0x32   : > { %p2954_p7 = pneg %p2953_p3 }
  0x34   : > { %p2961_p6 = pnand %p2960_p5, %p2954_p7 }
  0x36   : > { %2964 = shalt.err (!%p2961_p6)
}
  0x37   : > { %s3996_s17 = smov 128   ;;  %s3998_s14 = smov 8  }
  0x38   : > { %2812 = dma.hbm_to_vmem [thread:$0]  (!%p3369_p8), %s4032_s25, 256, %s488_s19, [#allocation5], %s3996_s17, %s3996_s17, %s3998_s14  }
  0x39   : > { %p142_p1 = scmp.eq.s32.totalorder %s141_s22, 0  ;;  %p151_p4 = scmp.ne.s32.totalorder %s3211_s28, %s3207_s27 }
  0x3a   : > { %p152_p5 = scmp.eq.s32.totalorder %s3215_s29, 0  ;;  %p2839_p6 = scmp.lt.s32.totalorder %s3215_s29, 2 }
  0x3b   : > { %s3411_s26 = scalar_select %p142_p1, %s3211_s28, %s144_s21  }
  0x3c   : > { %p153_p9 = por %p152_p5, %p151_p4  ;;  %s539_s18 = sand.u32 1, %s3215_s29  }
  0x3d   : > { %4034 = sst [smem:[#allocation21_spill]] %s3411_s26  ;;  %s3415_s23 = sand.u32 1, %s3211_s28  }
  0x3e   : > { %s2781_s20 = smul.u32 384, %s3415_s23  ;;  %p3418_p11 = pnand %p2839_p6, %p153_p9 }
  0x3f   : > { %s2782_s6 = smul.u32 6144, %s3215_s29  ;;  %s4036_s5 = sld [smem:[#allocation24_spill]] }
  0x40   : > { %s4035_s12 = scalar_select %p3418_p11, 1, 0 }
  0x41   : > { %s543_s21 = scalar_lea.vmem [#allocation11], %s2781_s20  ;;  %s3430_s17 = scalar_lea.sflag [#allocation5], %s539_s18 }
  0x42   : > { %s550_s24 = sshll.u32 %s543_s21, 4  ;;  %p3436_p13 = pneg %p3418_p11  ;;  %s3428_s24 = int_to_ptr.vmem [resolvable:$true] %s550_s24 }
  0x44   : > { %s4037_s25 = scalar_select %p3436_p13, 1, 0 }
  0x45   : > { %s3426_s22 = scalar_lea.hbm %s4036_s5, %s2782_s6  ;;  %s2970_s20 = scalar_lea.hbm %s4036_s5, 12288 }
  0x46   : > { %s2965_s14 = scalar_lea.hbm %s3426_s22, 6144  ;;  %p2971_p3 = scmp.lt.u32.totalorder %s3426_s22, %s4036_s5 }
  0x47   : > { %p2966_p12 = scmp.ne.s32.totalorder %s3426_s22, %s2965_s14  ;;  %p2972_p7 = scmp.lt.u32.totalorder %s2970_s20, %s2965_s14 }
  0x48   : > { %p2974_p4 = scmp.lt.u32.totalorder %s2965_s14, %s3426_s22 }
  0x49   : > { %p2968_p0 = pnand %p3436_p13, %p2966_p12  ;;  %p2973_p1 = por %p2972_p7, %p2971_p3 }
  0x4b   : > { %p2969_p2 = pneg %p2968_p0  ;;  %p2975_p5 = por %p2974_p4, %p2973_p1 }
  0x4d   : > { %p2976_p6 = pnand %p2975_p5, %p2969_p2 }
  0x4f   : > { %2979 = shalt.err (!%p2976_p6)
}
  0x50   : > { %s2980_s18 = scalar_lea.vmem %s3428_s24, 6144  ;;  %s3220_s6 = smov [#allocation11]  }
  0x51   : > { %p2981_p9 = scmp.ne.s32.totalorder %s3428_s24, %s2980_s18  ;;  %s2985_s15 = sshll.u32 %s3220_s6, 4  ;;  %s2986_s15 = int_to_ptr.vmem [resolvable:$false] %s2985_s15 }
  0x52   : > { %s2987_s19 = scalar_lea.vmem %s2986_s15, 12288  ;;  %p2988_p8 = scmp.lt.s32.totalorder %s3428_s24, %s2986_s15 }
  0x53   : > { %p2983_p12 = pnand %p2981_p9, %p3436_p13  ;;  %p2989_p10 = scmp.lt.s32.totalorder %s2987_s19, %s2980_s18 }
  0x55   : > { %p2984_p0 = pneg %p2983_p12  ;;  %p2990_p3 = por %p2989_p10, %p2988_p8 }
  0x57   : > { %p2991_p7 = pnand %p2990_p3, %p2984_p0 }
  0x59   : > { %2994 = shalt.err (!%p2991_p7)
}
  0x5a   : > { %s3221_s14 = smov 384   ;;  %s3222_s20 = smov 24  }
  0x5b   : > { %2825 = dma.hbm_to_vmem [thread:$0]  (!%p3418_p11), %s3426_s22, 6144, %s3428_s24, %s3430_s17, %s3221_s14, %s3221_s14, %s3222_s20  }
  0x5c   : > { %s2342_s21 = sshll.u32 %s3415_s23, 7  ;;  %s2390_s6 = sshll.u32 %s3215_s29, 11 }
  0x5d   : > { %s4038_s7 = sld [smem:[#allocation26_spill]]  ;;  %s571_s15 = scalar_lea.vmem [#allocation12], %s2342_s21 }
  0x5e   : > { %s578_s19 = sshll.u32 %s571_s15, 4  ;;  %s3223_s28 = smov [#allocation6]   ;;  %s3467_s19 = int_to_ptr.vmem [resolvable:$true] %s578_s19 }
  0x5f   : > { %s3469_s10 = sshll.u32 %s3223_s28, 4  ;;  %s501_s10 = int_to_ptr.vmem [resolvable:$true] %s3469_s10 }
  0x63   : > { %s3465_s18 = scalar_lea.hbm %s4038_s7, %s2390_s6  ;;  %s3000_s26 = scalar_lea.hbm %s4038_s7, 4096 }
  0x64   : > { %s2995_s9 = scalar_lea.hbm %s3465_s18, 2048  ;;  %p3001_p1 = scmp.lt.u32.totalorder %s3465_s18, %s4038_s7 }
  0x65   : > { %p2996_p8 = scmp.ne.s32.totalorder %s3465_s18, %s2995_s9  ;;  %p3002_p4 = scmp.lt.u32.totalorder %s3000_s26, %s2995_s9 }
  0x66   : > { %p3004_p6 = scmp.lt.u32.totalorder %s2995_s9, %s3465_s18 }
  0x67   : > { %p2998_p10 = pnand %p2996_p8, %p3436_p13  ;;  %p3003_p5 = por %p3002_p4, %p3001_p1 }
  0x69   : > { %p2999_p2 = pneg %p2998_p10  ;;  %p3005_p9 = por %p3004_p6, %p3003_p5 }
  0x6b   : > { %p3006_p12 = pnand %p3005_p9, %p2999_p2 }
  0x6d   : > { %3009 = shalt.err (!%p3006_p12)
}
  0x6e   : > { %s3010_s28 = scalar_lea.vmem %s3467_s19, 2048  ;;  %s3224_s20 = smov [#allocation12]  }
  0x6f   : > { %p3011_p0 = scmp.ne.s32.totalorder %s3467_s19, %s3010_s28  ;;  %s3015_s21 = sshll.u32 %s3224_s20, 4  ;;  %s3016_s21 = int_to_ptr.vmem [resolvable:$false] %s3015_s21 }
  0x70   : > { %s3017_s6 = scalar_lea.vmem %s3016_s21, 4096  ;;  %p3018_p8 = scmp.lt.s32.totalorder %s3467_s19, %s3016_s21 }
  0x71   : > { %p3013_p3 = pnand %p3011_p0, %p3436_p13  ;;  %p3019_p10 = scmp.lt.s32.totalorder %s3017_s6, %s3010_s28 }
  0x73   : > { %p3014_p7 = pneg %p3013_p3  ;;  %p3020_p1 = por %p3019_p10, %p3018_p8 }
  0x75   : > { %p3021_p4 = pnand %p3020_p1, %p3014_p7 }
  0x77   : > { %3024 = shalt.err (!%p3021_p4)
}
  0x78   : > { %s4039_s9 = smov 8   ;;  %s4040_s15 = smov 128  }
  0x79   : > { %2828 = dma.hbm_to_vmem [thread:$0]  (!%p3418_p11), %s3465_s18, 2048, %s3467_s19, %s3430_s17, %s4040_s15, %s4040_s15, %s4039_s9  }
  0x7a   : > { %s4008_s22 = sshll.u32 %s3415_s23, 8  ;;  %s4041_s24 = sld [smem:[#allocation23_spill]] }
  0x7b   : > { %p4042_p5 = scmp.ne.s32.totalorder %s4033_s16, 0 }
  0x80   : > { %s3025_s14 = scalar_lea.hbm %s4041_s24, 256 }
  0x81   : > { %p3026_p2 = scmp.ne.s32.totalorder %s4041_s24, %s3025_s14  ;;  %p3032_p12 = scmp.lt.u32.totalorder %s3025_s14, %s4041_s24 }
  0x83   : > { %p3028_p6 = pnand %p3026_p2, %p4042_p5 }
  0x85   : > { %p3029_p9 = pneg %p3028_p6 }
  0x87   : > { %p3034_p0 = pnand %p3032_p12, %p3029_p9 }
  0x89   : > { %3037 = shalt.err (!%p3034_p0)
}
  0x8a   : > { %s3038_s18 = scalar_lea.vmem %s501_s10, 256  ;;  %p3046_p10 = scmp.lt.s32.totalorder %s501_s10, %s501_s10 }
  0x8b   : > { %p3039_p3 = scmp.ne.s32.totalorder %s501_s10, %s3038_s18  ;;  %p3047_p1 = scmp.lt.s32.totalorder %s3038_s18, %s3038_s18 }
  0x8d   : > { %p3041_p7 = pnand %p3039_p3, %p4042_p5  ;;  %p3048_p4 = por %p3047_p1, %p3046_p10 }
  0x8f   : > { %p3042_p8 = pneg %p3041_p7 }
  0x91   : > { %p3049_p11 = pnand %p3048_p4, %p3042_p8 }
  0x93   : > { %3052 = shalt.err (!%p3049_p11)
}
  0x94   : > { %p4043_p2 = scmp.ne.s32.totalorder %s4030_s1, 0  ;;  %s4009_s26 = sshll.u32 %s3215_s29, 12 }
  0x95   : > { %s4044_s11 = sld [smem:[#allocation30_spill]]  ;;  %s610_s21 = scalar_lea.vmem [#allocation13], %s4008_s22 }
  0x96   : > { %2815 = dma.hbm_to_vmem [thread:$0]  (!%p4043_p2), %s4041_s24, 256, %s501_s10, [#allocation7], %s4040_s15, %s4040_s15, %s4039_s9  }
  0x97   : > { %s617_s6 = sshll.u32 %s610_s21, 4  ;;  %s3529_s6 = int_to_ptr.vmem [resolvable:$true] %s617_s6 }
  0x9b   : > { %s3525_s20 = scalar_lea.hbm %s4044_s11, %s4009_s26  ;;  %s3058_s5 = scalar_lea.hbm %s4044_s11, 8192 }
  0x9c   : > { %s3053_s18 = scalar_lea.hbm %s3525_s20, 4096  ;;  %p3059_p12 = scmp.lt.u32.totalorder %s3525_s20, %s4044_s11 }
  0x9d   : > { %p3054_p11 = scmp.ne.s32.totalorder %s3525_s20, %s3053_s18  ;;  %p3060_p0 = scmp.lt.u32.totalorder %s3058_s5, %s3053_s18 }
  0x9e   : > { %p3062_p7 = scmp.lt.u32.totalorder %s3053_s18, %s3525_s20 }
  0x9f   : > { %p3056_p6 = pnand %p3054_p11, %p3436_p13  ;;  %p3061_p3 = por %p3060_p0, %p3059_p12 }
  0xa1   : > { %p3057_p9 = pneg %p3056_p6  ;;  %p3063_p8 = por %p3062_p7, %p3061_p3 }
  0xa3   : > { %p3064_p10 = pnand %p3063_p8, %p3057_p9 }
  0xa5   : > { %3067 = shalt.err (!%p3064_p10)
}
  0xa6   : > { %s3068_s21 = scalar_lea.vmem %s3529_s6, 4096  ;;  %s3225_s10 = smov [#allocation13]  }
  0xa7   : > { %p3069_p1 = scmp.ne.s32.totalorder %s3529_s6, %s3068_s21  ;;  %s3073_s19 = sshll.u32 %s3225_s10, 4  ;;  %s3074_s19 = int_to_ptr.vmem [resolvable:$false] %s3073_s19 }
  0xa8   : > { %s3075_s14 = scalar_lea.vmem %s3074_s19, 8192  ;;  %p3076_p6 = scmp.lt.s32.totalorder %s3529_s6, %s3074_s19 }
  0xa9   : > { %p3071_p4 = pnand %p3069_p1, %p3436_p13  ;;  %p3077_p2 = scmp.lt.s32.totalorder %s3075_s14, %s3068_s21 }
  0xab   : > { %p3072_p11 = pneg %p3071_p4  ;;  %p3078_p12 = por %p3077_p2, %p3076_p6 }
  0xad   : > { %p3079_p0 = pnand %p3078_p12, %p3072_p11 }
  0xaf   : > { %3082 = shalt.err (!%p3079_p0)
}
  0xb0   : > { %s3226_s18 = smov 256   ;;  %s3227_s5 = smov 16  }
  0xb1   : > { %p4045_p9 = scmp.ne.s32.totalorder %s4035_s12, 0  ;;  %s3228_s28 = smov [#allocation8]  }
  0xb2   : > { %s514_s22 = sshll.u32 %s3228_s28, 4  ;;  %s3229_s10 = smov [#allocation9]   ;;  %s515_s22 = int_to_ptr.vmem [resolvable:$true] %s514_s22 }
  0xb3   : > { %2831 = dma.hbm_to_vmem [thread:$0]  (!%p4045_p9), %s3525_s20, 4096, %s3529_s6, %s3430_s17, %s3226_s18, %s3226_s18, %s3227_s5  }
  0xb4   : > { %s525_s26 = sshll.u32 %s3229_s10, 4  ;;  %s3083_s21 = scalar_lea.hbm %s3973_s2, 32  ;;  %s526_s26 = int_to_ptr.vmem [resolvable:$true] %s525_s26 }
  0xb5   : > { %p3084_p2 = scmp.ne.s32.totalorder %s3973_s2, %s3083_s21  ;;  %p3090_p8 = scmp.lt.u32.totalorder %s3083_s21, %s3973_s2 }
  0xb7   : > { %p3086_p3 = pnand %p3084_p2, %p4042_p5 }
  0xb9   : > { %p3087_p7 = pneg %p3086_p3 }
  0xbb   : > { %p3092_p10 = pnand %p3090_p8, %p3087_p7 }
  0xbd   : > { %3095 = shalt.err (!%p3092_p10)
}
  0xbe   : > { %s3096_s20 = scalar_lea.vmem %s515_s22, 32  ;;  %p3104_p6 = scmp.lt.s32.totalorder %s515_s22, %s515_s22 }
  0xbf   : > { %p3097_p1 = scmp.ne.s32.totalorder %s515_s22, %s3096_s20  ;;  %p3105_p12 = scmp.lt.s32.totalorder %s3096_s20, %s3096_s20 }
  0xc1   : > { %p3099_p4 = pnand %p3097_p1, %p4042_p5  ;;  %p3106_p0 = por %p3105_p12, %p3104_p6 }
  0xc3   : > { %p3100_p11 = pneg %p3099_p4 }
  0xc5   : > { %p3107_p9 = pnand %p3106_p0, %p3100_p11 }
  0xc7   : > { %3110 = shalt.err (!%p3107_p9)
}
  0xc8   : > { %p4046_p2 = scmp.ne.s32.totalorder %s4030_s1, 0  ;;  %s3111_s6 = scalar_lea.hbm %s3974_s3, 16 }
  0xc9   : > { %p3112_p3 = scmp.ne.s32.totalorder %s3974_s3, %s3111_s6  ;;  %p3118_p9 = scmp.lt.u32.totalorder %s3111_s6, %s3974_s3 }
  0xca   : > { %2818 = dma.hbm_to_vmem [thread:$0]  (!%p4046_p2), %s3973_s2, 32, %s515_s22, [#allocation7]  }
  0xcb   : > { %p3114_p7 = pnand %p3112_p3, %p4042_p5 }
  0xcd   : > { %p3115_p8 = pneg %p3114_p7 }
  0xcf   : > { %p3120_p10 = pnand %p3118_p9, %p3115_p8 }
  0xd1   : > { %3123 = shalt.err (!%p3120_p10)
}
  0xd2   : > { %s3124_s19 = scalar_lea.vmem %s526_s26, 16  ;;  %s3131_s22 = scalar_lea.vmem %s526_s26, 32 }
  0xd3   : > { %p3125_p1 = scmp.ne.s32.totalorder %s526_s26, %s3124_s19  ;;  %p3132_p6 = scmp.lt.s32.totalorder %s526_s26, %s526_s26 }
  0xd4   : > { %p3133_p12 = scmp.lt.s32.totalorder %s3131_s22, %s3124_s19 }
  0xd5   : > { %p3127_p4 = pnand %p3125_p1, %p4042_p5 }
  0xd6   : > { %p3134_p0 = por %p3133_p12, %p3132_p6 }
  0xd7   : > { %p3128_p11 = pneg %p3127_p4 }
  0xd9   : > { %p3135_p13 = pnand %p3134_p0, %p3128_p11 }
  0xdb   : > { %3138 = shalt.err (!%p3135_p13)
}
  0xdc   : > { %2821 = dma.hbm_to_vmem [thread:$0]  (!%p4046_p2), %s3974_s3, 16, %s526_s26, [#allocation10]  }
  0xdd   : > { %s4047_s20 = sshll.u32 %s3215_s29, 12  ;;  %s4048_s8 = sshll.u32 %s3415_s23, 8 }
  0xde   : > { %s3594_s11 = scalar_lea.hbm %s3984_s13, %s4047_s20  ;;  %s638_s24 = scalar_lea.vmem [#allocation14], %s4048_s8 }
  0xdf   : > { %s645_s1 = sshll.u32 %s638_s24, 4  ;;  %s3139_s6 = scalar_lea.hbm %s3594_s11, 4096  ;;  %s3598_s1 = int_to_ptr.vmem [resolvable:$true] %s645_s1 }
  0xe0   : > { %p3140_p13 = scmp.ne.s32.totalorder %s3594_s11, %s3139_s6  ;;  %p4049_p5 = scmp.ne.s32.totalorder %s4037_s25, 0 }
  0xe1   : > { %s3144_s18 = scalar_lea.hbm %s3984_s13, 8192  ;;  %p3145_p7 = scmp.lt.u32.totalorder %s3594_s11, %s3984_s13 }
  0xe2   : > { %p3142_p3 = pnand %p3140_p13, %p4049_p5  ;;  %p3146_p8 = scmp.lt.u32.totalorder %s3144_s18, %s3139_s6 }
  0xe3   : > { %p3148_p10 = scmp.lt.u32.totalorder %s3139_s6, %s3594_s11 }
  0xe4   : > { %p3143_p2 = pneg %p3142_p3  ;;  %p3147_p9 = por %p3146_p8, %p3145_p7 }
  0xe6   : > { %p3149_p1 = por %p3148_p10, %p3147_p9 }
  0xe8   : > { %p3150_p4 = pnand %p3149_p1, %p3143_p2 }
  0xea   : > { %3153 = shalt.err (!%p3150_p4)
}
  0xeb   : > { %s3154_s23 = scalar_lea.vmem %s3598_s1, 4096  ;;  %s3230_s10 = smov [#allocation14]  }
  0xec   : > { %p3155_p11 = scmp.ne.s32.totalorder %s3598_s1, %s3154_s23  ;;  %s3159_s19 = sshll.u32 %s3230_s10, 4  ;;  %s3160_s19 = int_to_ptr.vmem [resolvable:$false] %s3159_s19 }
  0xed   : > { %s3161_s22 = scalar_lea.vmem %s3160_s19, 8192  ;;  %p3162_p0 = scmp.lt.s32.totalorder %s3598_s1, %s3160_s19 }
  0xee   : > { %p3157_p6 = pnand %p3155_p11, %p4049_p5  ;;  %p3163_p13 = scmp.lt.s32.totalorder %s3161_s22, %s3154_s23 }
  0xf0   : > { %p3158_p12 = pneg %p3157_p6  ;;  %p3164_p3 = por %p3163_p13, %p3162_p0 }
  0xf2   : > { %p3165_p7 = pnand %p3164_p3, %p3158_p12 }
  0xf4   : > { %3168 = shalt.err (!%p3165_p7)
}
  0xf5   : > { %p4050_p2 = scmp.ne.s32.totalorder %s4035_s12, 0  ;;  %p4051_p5 = scmp.ne.s32.totalorder %s4029_s30, 0 }
  0xf6   : > { %p4052_p8 = scmp.eq.s32.totalorder (!%p4051_p5), %s3348_s4, 0 }
  0xf7   : > { %2834 = dma.hbm_to_vmem [thread:$0]  (!%p4050_p2), %s3594_s11, 4096, %s3598_s1, %s3430_s17, %s4040_s15, %s4040_s15, %s4039_s9  }
  0xf8   : > { %675 = sbr.rel (%p4051_p5) target bundleno = 3543 (0xdd7), region = 88 }
  0xff   : > { %3186 = dma.done.wait (%p4052_p8), [#allocation5], 256   ;;  %p4053_p9 = pmov %p4052_p8 }
 0x100   : > { %p4054_p10 = pmov %p4052_p8 }
 0x101   : > { %3188 = vsyncadd (%p4053_p9), [#allocation5], 4294967040 }
 0x102   : > { %3190 = dma.done.wait (%p4054_p10), [#allocation7], 288   ;;  %p4055_p1 = pmov %p4052_p8 }
 0x104   : > { %3192 = vsyncadd (%p4055_p1), [#allocation7], 4294967008  ;;  %p4056_p4 = pmov %p4055_p1 }
 0x105   : > { %p4057_p11 = pmov %p4055_p1 }
 0x106   : > { %3194 = dma.done.wait (%p4056_p4), [#allocation10], 16  }
 0x107   : > { %3196 = vsyncadd (%p4057_p11), [#allocation10], 4294967280  ;;  %s693_s12 = sand.u32 1, %s3348_s4   ;;  %s695_s30 = sand.u32 1, %s3207_s27  }
 0x108   : > { %s2783_s25 = smul.u32 384, %s695_s30  ;;  %s694_s17 = scalar_lea.sflag [#allocation5], %s693_s12 }
 0x109   : > { %p4058_p6 = scmp.ne.s32.totalorder %s4028_s0, 0 }
 0x10a   : > { %s3641_s9 = scalar_lea.vmem [#allocation11], %s2783_s25 }
 0x10b   : > { %3198 = dma.done.wait (%p4058_p6), %s694_s17, 16384  }
 0x10c   : > { %3200 = vsyncadd (%p4058_p6), %s694_s17, 4294950912  ;;  %s2356_s15 = sshll.u32 %s695_s30, 7  ;;  %s2357_s21 = sshll.u32 %s695_s30, 8 }
 0x10d   : > { %p811_p12 = scmp.lt.s32.totalorder %s3348_s4, 1  ;;  %s4059_s0 = sld [smem:[#allocation27_spill]] }
 0x10e   : > { %s4062_s10 = sld [smem:[#allocation25_spill]]  ;;  %s4063_s25 = sld [smem:[#allocation31_spill]] }
 0x10f   : > { %s3649_s14 = scalar_select %p811_p12, %s3348_s4, 1 }
 0x110   : > { %s4065_s6 = sld [smem:[#allocation33_spill]]  ;;  %s4066_s5 = sld [smem:[#allocation34_spill]] }
 0x111   : > { %s2784_s20 = smul.u32 3, %s3649_s14  ;;  %s2359_s22 = sshll.u32 %s3649_s14, 1 }
 0x112   : > { %s3689_s23 = scalar_lea.vmem [#allocation13], %s2357_s21  ;;  %p4067_p0 = scmp.ne.s32.totalorder %s3348_s4, 0 }
 0x113   : > { %s817_s11 = scalar_lea.vmem %s4059_s0, %s3649_s14  ;;  %s4064_s0 = sld [smem:[#allocation32_spill]]  ;;  %v841_v1 = vld [vmem:[#allocation4] sm:$0xff] (!%p4067_p0)  ;;  %v842_v2 = vld [vmem:[#allocation4 + $0x8] sm:$0xff] (!%p4067_p0) }
 0x114   : > { %s3667_s19 = scalar_lea.vmem %s4062_s10, %s2784_s20  ;;  %s3673_s17 = scalar_lea.vmem %s4063_s25, %s2359_s22  ;;  %843 = vst [vmem:[#allocation2] sm:$0xff] (!%p4067_p0), %v841_v1  ;;  %844 = vst [vmem:[#allocation2 + $0x8] sm:$0xff] (!%p4067_p0), %v842_v2 }
 0x115   : > { %s3687_s20 = scalar_lea.vmem [#allocation12], %s2356_s15  ;;  %s3691_s10 = scalar_lea.vmem [#allocation14], %s2357_s21 }
 0x116   : > { %s833_s29 = scalar_lea.vmem %s4065_s6, %s3649_s14  ;;  %s836_s28 = scalar_lea.vmem %s4066_s5, %s3649_s14 }
 0x117   : > { %840 = sbr.rel (%p4067_p0) target bundleno = 286 (0x11e), region = 124 }
 0x119   : > { %s830_s8 = scalar_lea.vmem %s4064_s0, %s3649_s14 }
 0x11e PF: > { %v850_v3 = vld [vmem:[%s3641_s9 + $0x8] sm:$0xff]  ;;  %v853_v4 = vld [vmem:[%s3641_s9 + $0x20] sm:$0xff]  ;;  %v852_v7 = vld [vmem:[%s3641_s9 + $0x18] sm:$0xff]  ;;  %v3231_v10 = vmov 0.0   ;;  %v899_v54 = vlaneseq  ;;  %vm1082_vm0 = vcmask 523264   ;;  %s3232_s15 = smov 64  }
 0x11f   : > { %v849_v5 = vld [vmem:[%s3641_s9] sm:$0xff]  ;;  %v2596_v6 = vpack.c.bf16 %v853_v4, %v850_v3  ;;  %v856_v8 = vld [vmem:[%s3641_s9 + $0x38] sm:$0xff]  ;;  %v859_v9 = vld [vmem:[%s3641_s9 + $0x50] sm:$0xff]  ;;  %978 = vmatprep.mubr.f32.mxu0 %v3231_v10  ;;  %vm1174_vm2 = vcmask 130048   ;;  %s4073_s25 = sld [smem:[#allocation29_spill]]  ;;  %p2383_p13 = scmp.ne.s32.totalorder %s3348_s4, 1 }
 0x120   : > { %v2598_v11 = vpack.c.bf16 %v852_v7, %v849_v5  ;;  %v2600_v12 = vpack.c.bf16 %v859_v9, %v856_v8  ;;  %v855_v13 = vld [vmem:[%s3641_s9 + $0x30] sm:$0xff]  ;;  %v858_v14 = vld [vmem:[%s3641_s9 + $0x48] sm:$0xff]  ;;  %v865_v16 = vld [vmem:[%s3641_s9 + $0x80] sm:$0xff]  ;;  %v3736_v55 = vshrl.u32 %v899_v54, 7  ;;  %vm3234_vm3 = vmmov (!%p2383_p13), 0  }
 0x121   : > { %v862_v15 = vld [vmem:[%s3641_s9 + $0x68] sm:$0xff]  ;;  %2597 = vmatprep.subr.bf16.mxu0 %v2596_v6  ;;  %v2602_v17 = vpack.c.bf16 %v858_v14, %v855_v13  ;;  %v861_v19 = vld [vmem:[%s3641_s9 + $0x60] sm:$0xff]  ;;  %v864_v20 = vld [vmem:[%s3641_s9 + $0x78] sm:$0xff]  ;;  %vm2099_vm4 = vcmask (!%p2383_p13), 1041408   ;;  %vm2117_vm5 = vcmask (!%p2383_p13), 1024  }
 0x122   : > { %2599 = vmatpush1.bf16.msra.mxu0 %v2598_v11  ;;  %v2604_v18 = vpack.c.bf16 %v865_v16, %v862_v15  ;;  %v868_v21 = vld [vmem:[%s3641_s9 + $0x98] sm:$0xff]  ;;  %v871_v22 = vld [vmem:[%s3641_s9 + $0xb0] sm:$0xff]  ;;  %v2606_v23 = vpack.c.bf16 %v864_v20, %v861_v19  ;;  %v870_v26 = vld [vmem:[%s3641_s9 + $0xa8] sm:$0xff]  ;;  %v901_v0 = vsub.s32 0, %v3736_v55  ;;  %v905_v6 = vsub.s32 1, %v3736_v55 }
 0x123   : > { %2601 = vmatprep.subr.bf16.mxu0 %v2600_v12  ;;  %v2608_v24 = vpack.c.bf16 %v871_v22, %v868_v21  ;;  %v867_v25 = vld [vmem:[%s3641_s9 + $0x90] sm:$0xff]  ;;  %v874_v27 = vld [vmem:[%s3641_s9 + $0xc8] sm:$0xff]  ;;  %v877_v28 = vld [vmem:[%s3641_s9 + $0xe0] sm:$0xff] }
 0x124   : > { %v3714_v29 = vld [vmem:[#allocation2] sm:$0xff]  ;;  %v2610_v30 = vpack.c.bf16 %v870_v26, %v867_v25  ;;  %v2612_v31 = vpack.c.bf16 %v877_v28, %v874_v27  ;;  %v873_v32 = vld [vmem:[%s3641_s9 + $0xc0] sm:$0xff]  ;;  %v876_v33 = vld [vmem:[%s3641_s9 + $0xd8] sm:$0xff] }
 0x125   : > { %2520 = vmatprep.mubr.f32.mxu1 %v3714_v29  ;;  %v880_v34 = vld [vmem:[%s3641_s9 + $0xf8] sm:$0xff]  ;;  %v883_v35 = vld [vmem:[%s3641_s9 + $0x110] sm:$0xff]  ;;  %v2614_v36 = vpack.c.bf16 %v876_v33, %v873_v32  ;;  %v882_v39 = vld [vmem:[%s3641_s9 + $0x108] sm:$0xff]  ;;  %s4074_s7 = scalar_lea.vmem %s4073_s25, %s3649_s14 }
 0x126   : > { %2603 = vmatpush1.bf16.msra.mxu0 %v2602_v17  ;;  %v2616_v37 = vpack.c.bf16 %v883_v35, %v880_v34  ;;  %v879_v38 = vld [vmem:[%s3641_s9 + $0xf0] sm:$0xff]  ;;  %v886_v40 = vld [vmem:[%s3641_s9 + $0x128] sm:$0xff]  ;;  %v889_v41 = vld [vmem:[%s3641_s9 + $0x140] sm:$0xff] }
 0x127   : > { %2605 = vmatprep.subr.bf16.mxu0 %v2604_v18  ;;  %v2618_v42 = vpack.c.bf16 %v882_v39, %v879_v38  ;;  %v2620_v43 = vpack.c.bf16 %v889_v41, %v886_v40  ;;  %v885_v44 = vld [vmem:[%s3641_s9 + $0x120] sm:$0xff]  ;;  %v888_v45 = vld [vmem:[%s3641_s9 + $0x138] sm:$0xff]  ;;  %v895_v47 = vld [vmem:[%s3641_s9 + $0x170] sm:$0xff] }
 0x128   : > { %v892_v46 = vld [vmem:[%s3641_s9 + $0x158] sm:$0xff]  ;;  %v2622_v48 = vpack.c.bf16 %v888_v45, %v885_v44  ;;  %v891_v50 = vld [vmem:[%s3641_s9 + $0x150] sm:$0xff]  ;;  %v894_v51 = vld [vmem:[%s3641_s9 + $0x168] sm:$0xff]  ;;  %v909_v44 = vsub.s32 2, %v3736_v55 }
 0x129   : > { %v2624_v49 = vpack.c.bf16 %v895_v47, %v892_v46  ;;  %v2626_v52 = vpack.c.bf16 %v894_v51, %v891_v50  ;;  %v3733_v53 = vld [vmem:[#allocation2 + $0x8] sm:$0xff]  ;;  %v854_v57 = vld [vmem:[%s3641_s9 + $0x28] sm:$0xff]  ;;  %v857_v58 = vld [vmem:[%s3641_s9 + $0x40] sm:$0xff] }
 0x12a   : > { %2607 = vmatpush1.bf16.msra.mxu0 %v2606_v23  ;;  %v851_v56 = vld [vmem:[%s3641_s9 + $0x10] sm:$0xff]  ;;  %v860_v60 = vld [vmem:[%s3641_s9 + $0x58] sm:$0xff]  ;;  %v866_v63 = vld [vmem:[%s3641_s9 + $0x88] sm:$0xff] }
 0x12b   : > { %2609 = vmatprep.subr.bf16.mxu0 %v2608_v24  ;;  %v2628_v59 = vpack.c.bf16 %v854_v57, %v851_v56  ;;  %v2632_v61 = vpack.c.bf16 %v860_v60, %v857_v58  ;;  %v863_v62 = vld [vmem:[%s3641_s9 + $0x70] sm:$0xff]  ;;  %v3746_v1 = vld [vmem:[%s3667_s19] sm:$0x7]  ;;  %v869_v3 = vld [vmem:[%s3641_s9 + $0xa0] sm:$0xff]  ;;  %s4071_s19 = sld [smem:[#allocation28_spill]] }
 0x12c   : > { %v2636_v2 = vpack.c.bf16 %v866_v63, %v863_v62  ;;  %v872_v4 = vld [vmem:[%s3641_s9 + $0xb8] sm:$0xff]  ;;  %v902_v5 = vrot.slane %v3746_v1, %v901_v0  ;;  %v875_v8 = vld [vmem:[%s3641_s9 + $0xd0] sm:$0xff]  ;;  %v878_v9 = vld [vmem:[%s3641_s9 + $0xe8] sm:$0xff]  ;;  %v906_v14 = vrot.slane %v3746_v1, %v905_v6  ;;  %v910_v45 = vrot.slane %v3746_v1, %v909_v44 }
 0x12d   : > { %2629 = vmatprep.subr.bf16.mxu1 %v2628_v59  ;;  %v2640_v7 = vpack.c.bf16 %v872_v4, %v869_v3  ;;  %v2644_v15 = vpack.c.bf16 %v878_v9, %v875_v8  ;;  %v881_v16 = vld [vmem:[%s3641_s9 + $0x100] sm:$0xff]  ;;  %v884_v17 = vld [vmem:[%s3641_s9 + $0x118] sm:$0xff]  ;;  %vm3765_vm1 = vmpackc.low %vm1082_vm0, %vm1082_vm0 }
 0x12e   : > { %2611 = vmatpush1.bf16.msra.mxu0 %v2610_v30  ;;  %2631 = vmatpush3.bf16.msra.mxu1 %v2628_v59  ;;  %v2648_v22 = vpack.c.bf16 %v884_v17, %v881_v16  ;;  %v887_v24 = vld [vmem:[%s3641_s9 + $0x130] sm:$0xff]  ;;  %v890_v25 = vld [vmem:[%s3641_s9 + $0x148] sm:$0xff]  ;;  %v893_v30 = vld [vmem:[%s3641_s9 + $0x160] sm:$0xff] }
 0x12f   : > { %2613 = vmatprep.subr.bf16.mxu0 %v2612_v31  ;;  %2633 = vmatprep.subr.bf16.mxu1 %v2632_v61  ;;  %v2652_v28 = vpack.c.bf16 %v890_v25, %v887_v24  ;;  %v896_v31 = vld [vmem:[%s3641_s9 + $0x178] sm:$0xff]  ;;  %v1075_v44 = vld [vmem:[%s3687_s20 + $0x48] sm:$0xff] }
 0x130   : > { %v2656_v32 = vpack.c.bf16 %v896_v31, %v893_v30  ;;  %v848_v39 = vld [vmem:[#allocation6 + $0x8] sm:$0xff] }
 0x131   : > { %s4072_s22 = scalar_lea.vmem %s4071_s19, %s3649_s14 }
 0x132   : > { %2615 = vmatpush1.bf16.msra.mxu0 %v2614_v36  ;;  %2635 = vmatpush3.bf16.msra.mxu1 %v2632_v61  ;;  %v3779_v36 = vld [vmem:[#allocation6] sm:$0xff] }
 0x133   : > { %2617 = vmatprep.subr.bf16.mxu0 %v2616_v37  ;;  %2637 = vmatprep.subr.bf16.mxu1 %v2636_v2 }
 0x136   : > { %2619 = vmatpush1.bf16.msra.mxu0 %v2618_v42  ;;  %2639 = vmatpush3.bf16.msra.mxu1 %v2636_v2 }
 0x137   : > { %2621 = vmatprep.subr.bf16.mxu0 %v2620_v43  ;;  %2641 = vmatprep.subr.bf16.mxu1 %v2640_v7 }
 0x13a   : > { %2623 = vmatpush1.bf16.msra.mxu0 %v2622_v48  ;;  %2643 = vmatpush3.bf16.msra.mxu1 %v2640_v7 }
 0x13b   : > { %2625 = vmatprep.subr.bf16.mxu0 %v2624_v49  ;;  %2645 = vmatprep.subr.bf16.mxu1 %v2644_v15 }
 0x13e   : > { %2627 = vmatpush1.bf16.msra.mxu0 %v2626_v52  ;;  %2647 = vmatpush3.bf16.msra.mxu1 %v2644_v15 }
 0x13f   : > { %2649 = vmatprep.subr.bf16.mxu1 %v2648_v22 }
 0x141   : > { %979 = vmatmul.mubr.f32.vlgmr.msra.gmra.mrb[0].mxu0 %v3714_v29 }
 0x142   : > { %984 = vmatprep.mubr.f32.mxu0 %v3231_v10  ;;  %2651 = vmatpush3.bf16.msra.mxu1 %v2648_v22 }
 0x143   : > { %2653 = vmatprep.subr.bf16.mxu1 %v2652_v28 }
 0x145   : > { %985 = vmatmul.mubr.f32.gmra.mrb[2].mxu0 %v3733_v53 }
 0x146   : > { %2655 = vmatpush3.bf16.msra.mxu1 %v2652_v28 }
 0x147   : > { %2657 = vmatprep.subr.bf16.mxu1 %v2656_v32 }
 0x14a   : > { %2659 = vmatpush3.bf16.msra.mxu1 %v2656_v32 }
 0x14d   : > { %2521 = vmatmul.mubr.f32.vlgmr.msra.gmra.mrb[0].mxu1 %v3733_v53 }
 0x214   : > { %v980_v11 = vpop.f32.mrb[0].mxu0 }
 0x215   : > { %v981_v12 = vadd.f32 %v980_v11, %v902_v5  ;;  %v982_v13 = vpop.f32.mrb[1].mxu0 }
 0x216   : > { %v983_v20 = vadd.f32 %v982_v13, %v906_v14 }
 0x217   : > { %1278 = vrot.lane.b32.xlu1 %v981_v12, %s3232_s15  ;;  %2527 = vmatprep.mubr.msk.f32.mxu0 %vm1082_vm0, %v981_v12 }
 0x218   : > { %v986_v18 = vpop.f32.mrb[2].mxu0 }
 0x219   : > { %v988_v19 = vpop.f32.mrb[3].mxu0  ;;  %v987_v33 = vadd.f32 %v986_v18, %v902_v5 }
 0x21a   : > { %v989_v21 = vadd.f32 %v988_v19, %v906_v14 }
 0x21c   : > { %v2891_v26 = vpack.i.bf16 %v989_v21, %v983_v20  ;;  %v2660_v27 = vpack.c.bf16 %v989_v21, %v983_v20 }
 0x21e   : > { %2662 = vmatprep.subr.msk.bf16.mxu0 %vm3765_vm1, %v2660_v27 }
 0x21f   : > { %2665 = vmatpush3.bf16.xpose.msk.msra.mxu0 %vm3765_vm1, %v2660_v27 }
 0x220   : > { %v2522_v46 = vpop.f32.mrb[0].mxu1 }
 0x221   : > { %v1057_v47 = vpop.f32.mrb[1].mxu1  ;;  %v1063_v48 = vadd.f32 %v2522_v46, %v910_v45 }
 0x222   : > { %v1058_v49 = vadd.f32 %v1057_v47, %v910_v45  ;;  %v1076_v45 = vld [vmem:[%s3687_s20 + $0x50] sm:$0xff]  ;;  %v1077_v47 = vld [vmem:[%s3687_s20 + $0x58] sm:$0xff] }
 0x224   : > { %v2896_v50 = vpack.i.bf16 %v1063_v48, %v1058_v49  ;;  %v2666_v51 = vpack.c.bf16 %v1063_v48, %v1058_v49  ;;  %v2684_v48 = vpack.c.bf16 %v1077_v47, %v1076_v45  ;;  %v1078_v49 = vld [vmem:[%s3687_s20 + $0x60] sm:$0xff] }
 0x226   : > { %2528 = vmatmul.mubr.msk.f32.vlgmr.msra.gmra.mrb[4].mxu0 %vm1082_vm0, %v987_v33  ;;  %2667 = vmatprep.subr.bf16.mxu1 %v2666_v51 }
 0x227   : > { %2669 = vmatpush3.bf16.msra.mxu1 %v2666_v51 }
 0x289   : > { %v1279_v5 = vpop.permute.xlu1 %1278 }
 0x2f9   : > { %v2529_v34 = vpop.f32.mrb[4].mxu0 }
 0x2fa   : > { %v1161_v35 = vpop.f32.mrb[5].mxu0  ;;  %v1171_v37 = vmul.f32 0.125, %v2529_v34 }
 0x2fb   : > { %v1170_v38 = vmul.f32 0.125, %v1161_v35 }
 0x2fc   : > { %v1173_v42 = vadd.f32 %v1171_v37, %v848_v39 }
 0x2fd   : > { %v1172_v40 = vadd.f32 %v1170_v38, %v3779_v36 }
 0x2fe   : > { %v1178_v43 = vsel %vm1174_vm2, %v1173_v42, -inf }
 0x2ff   : > { %v1175_v41 = vsel %vm1174_vm2, %v1172_v40, -inf }
 0x300   : > { %1176 = vmax.xlane.f32.xlu0 %v1175_v41  ;;  %v1067_v41 = vld [vmem:[%s3687_s20 + $0x8] sm:$0xff] }
 0x304   : > { %1179 = vmax.xlane.f32.xlu0 %v1178_v43  ;;  %v1074_v43 = vld [vmem:[%s3687_s20 + $0x40] sm:$0xff] }
 0x305   : > { %v2680_v46 = vpack.c.bf16 %v1075_v44, %v1074_v43 }
 0x31a   : > { %2892 = vrot.lane.b32.xlu0 %v2891_v26, %s3232_s15 }
 0x38d   : > { %v1177_v52 = vpop.xlane.xlu0 %1176 }
 0x38e   : > { %v1181_v54 = vsub.f32 %v1172_v40, %v1177_v52  ;;  %v1066_v40 = vld [vmem:[%s3687_s20] sm:$0xff]  ;;  %v1080_v52 = vld [vmem:[%s3687_s20 + $0x70] sm:$0xff] }
 0x390   : > { %v1183_v58 = vmul.f32 1.442695, %v1181_v54  ;;  %v1081_v54 = vld [vmem:[%s3687_s20 + $0x78] sm:$0xff] }
 0x391   : > { %v1180_v56 = vpop.xlane.xlu0 %1179 }
 0x392   : > { %v1182_v57 = vsub.f32 %v1173_v42, %v1180_v56  ;;  %v2696_v42 = vpack.c.bf16 %v1067_v41, %v1066_v40  ;;  %v2692_v56 = vpack.c.bf16 %v1081_v54, %v1080_v52  ;;  %v1710_v52 = vld [vmem:[%s3689_s23 + $0x60] sm:$0xff]  ;;  %v1712_v54 = vld [vmem:[%s3689_s23 + $0x70] sm:$0xff] }
 0x394   : > { %v1185_v59 = vmul.f32 1.442695, %v1182_v57 }
 0x395   : > { %v2893_v60 = vpop.permute.xlu0 %2892 }
 0x396   : > { %2901 = vpow2.f32 %v1185_v59  ;;  %v2895_v61 = vunpack.i.h.bf16 %v2893_v60  ;;  %v2894_v62 = vunpack.i.l.bf16 %v2893_v60 }
 0x397   : > { %2903 = vpow2.f32 %v1183_v58 }
 0x398   : > { %v2670_v63 = vpack.c.bf16 %v2895_v61, %v2894_v62  ;;  %v1068_v61 = vld [vmem:[%s3687_s20 + $0x10] sm:$0xff]  ;;  %v1069_v62 = vld [vmem:[%s3687_s20 + $0x18] sm:$0xff] }
 0x39a   : > { %2672 = vmatprep.subr.msk.bf16.mxu1 %vm3765_vm1, %v2670_v63 }
 0x3a0   : > { %v2902_v1 = vpop.eup %2901 }
 0x3a1   : > { %v1190_v2 = vsel %vm1174_vm2, %v2902_v1, 0.0  ;;  %v2904_v3 = vpop.eup %2903 }
 0x3a2   : > { %1191 = vadd.xlane.f32.xlu1 %v1190_v2  ;;  %v1187_v4 = vsel %vm1174_vm2, %v2904_v3, 0.0  ;;  %v2700_v2 = vpack.c.bf16 %v1069_v62, %v1068_v61  ;;  %v1716_v61 = vld [vmem:[%s3689_s23 + $0x90] sm:$0xff] }
 0x3a6   : > { %1188 = vadd.xlane.f32.xlu1 %v1187_v4  ;;  %v1071_v4 = vld [vmem:[%s3687_s20 + $0x28] sm:$0xff] }
 0x3b7   : > { %1280 = vrot.lane.b32.xlu1 %v987_v33, %s3232_s15 }
 0x42f   : > { %v1192_v7 = vpop.xlane.xlu1 %1191 }
 0x430   : > { %2905 = vrcp.f32 %v1192_v7  ;;  %v1072_v7 = vld [vmem:[%s3687_s20 + $0x30] sm:$0xff] }
 0x433   : > { %v1189_v8 = vpop.xlane.xlu1 %1188 }
 0x434   : > { %2907 = vrcp.f32 %v1189_v8  ;;  %v1073_v8 = vld [vmem:[%s3687_s20 + $0x38] sm:$0xff] }
 0x437   : > { %v1281_v14 = vpop.permute.xlu1 %1280 }
 0x43a   : > { %v2906_v9 = vpop.eup %2905 }
 0x43b   : > { %v1196_v13 = vmul.f32 %v2906_v9, %v2902_v1  ;;  %v2708_v9 = vpack.c.bf16 %v1073_v8, %v1072_v7  ;;  %v1725_v8 = vld [vmem:[%s3689_s23 + $0xd8] sm:$0xff] }
 0x43e   : > { %v2908_v11 = vpop.eup %2907 }
 0x43f   : > { %v1194_v12 = vmul.f32 %v2908_v11, %v2904_v3  ;;  %v1070_v3 = vld [vmem:[%s3687_s20 + $0x20] sm:$0xff] }
 0x441   : > { %2534 = vmatprep.mubr.msk.f32.mxu1 %vm1174_vm2, %v1194_v12 }
 0x442   : > { %2535 = vmatmul.mubr.msk.f32.vlgmr.msra.gmra.mrb[2].mxu1 %vm1174_vm2, %v1196_v13 }
 0x443   : > { %2675 = vmatpush3.bf16.xpose.msk.msra.mxu1 %vm3765_vm1, %v2670_v63  ;;  %2541 = vmatprep.mubr.msk.f32.mxu1 %vm1082_vm0, %v1279_v5  ;;  %v2704_v5 = vpack.c.bf16 %v1071_v4, %v1070_v3  ;;  %v1718_v3 = vld [vmem:[%s3689_s23 + $0xa0] sm:$0xff]  ;;  %v1720_v4 = vld [vmem:[%s3689_s23 + $0xb0] sm:$0xff] }
 0x444   : > { %2681 = vmatprep.subr.bf16.mxu1 %v2680_v46  ;;  %v2734_v7 = vpack.c.bf16 %v1720_v4, %v1718_v3  ;;  %v1882_v3 = vld [vmem:[%s3691_s10 + $0xd8] sm:$0xff] }
 0x44a   : > { %2542 = vmatmul.mubr.msk.f32.vlgmr.msra.gmra.mrb[4].mxu1 %vm1082_vm0, %v1281_v14 }
 0x44b   : > { %2683 = vmatpush3.bf16.msra.mxu1 %v2680_v46 }
 0x44c   : > { %2685 = vmatprep.subr.bf16.mxu1 %v2684_v48 }
 0x44f   : > { %2687 = vmatpush3.bf16.msra.mxu1 %v2684_v48 }
 0x515   : > { %v3798_v15 = vpop.f32.mrb[2].mxu1 }
 0x516   : > { %v3800_v16 = vpop.f32.mrb[3].mxu1 }
 0x51d   : > { %v2543_v17 = vpop.f32.mrb[4].mxu1 }
 0x51e   : > { %v1370_v18 = vmul.f32 0.125, %v2543_v17  ;;  %v1360_v19 = vpop.f32.mrb[5].mxu1 }
 0x51f   : > { %v1369_v20 = vmul.f32 0.125, %v1360_v19  ;;  %v2377_v19 = vld [vmem:[%s817_s11] ss:$0 sm:$0xff] }
 0x520   : > { %v1372_v21 = vadd.f32 %v1370_v18, %v848_v39 }
 0x521   : > { %v1371_v22 = vadd.f32 %v1369_v20, %v3779_v36 }
 0x522   : > { %v1376_v24 = vsel %vm1174_vm2, %v1372_v21, -inf }
 0x523   : > { %1377 = vmax.xlane.f32.xlu0 %v1376_v24  ;;  %v1373_v23 = vsel %vm1174_vm2, %v1371_v22, -inf }
 0x524   : > { %1374 = vmax.xlane.f32.xlu1 %v1373_v23  ;;  %v1699_v23 = vld [vmem:[%s3689_s23 + $0x8] sm:$0xff] }
 0x535   : > { %2897 = vrot.lane.b32.xlu1 %v2896_v50, %s3232_s15  ;;  %v1079_v50 = vld [vmem:[%s3687_s20 + $0x68] sm:$0xff] }
 0x536   : > { %v2688_v51 = vpack.c.bf16 %v1079_v50, %v1078_v49  ;;  %v1711_v49 = vld [vmem:[%s3689_s23 + $0x68] sm:$0xff]  ;;  %v1713_v50 = vld [vmem:[%s3689_s23 + $0x78] sm:$0xff] }
 0x538   : > { %2689 = vmatprep.subr.bf16.mxu1 %v2688_v51 }
 0x539   : > { %2691 = vmatpush3.bf16.msra.mxu1 %v2688_v51  ;;  %v2724_v51 = vpack.c.bf16 %v1713_v50, %v1711_v49  ;;  %v1859_v49 = vld [vmem:[%s3691_s10 + $0x20] sm:$0xff]  ;;  %v1860_v50 = vld [vmem:[%s3691_s10 + $0x28] sm:$0xff] }
 0x53a   : > { %2693 = vmatprep.subr.bf16.mxu1 %v2692_v56 }
 0x53d   : > { %2695 = vmatpush3.bf16.msra.mxu1 %v2692_v56  ;;  %v2726_v56 = vpack.c.bf16 %v1712_v54, %v1710_v52  ;;  %v1877_v52 = vld [vmem:[%s3691_s10 + $0xb0] sm:$0xff]  ;;  %v1878_v54 = vld [vmem:[%s3691_s10 + $0xb8] sm:$0xff] }
 0x5b0   : > { %v1378_v25 = vpop.xlane.xlu0 %1377 }
 0x5b1   : > { %v1380_v26 = vsub.f32 %v1372_v21, %v1378_v25  ;;  %v1375_v27 = vpop.xlane.xlu1 %1374  ;;  %v1701_v25 = vld [vmem:[%s3689_s23 + $0x18] sm:$0xff] }
 0x5b2   : > { %v1379_v28 = vsub.f32 %v1371_v22, %v1375_v27  ;;  %v2712_v27 = vpack.c.bf16 %v1701_v25, %v1699_v23  ;;  %v1856_v23 = vld [vmem:[%s3691_s10 + $0x8] sm:$0xff] }
 0x5b3   : > { %v1383_v30 = vmul.f32 1.442695, %v1380_v26  ;;  %v1698_v26 = vld [vmem:[%s3689_s23] sm:$0xff] }
 0x5b4   : > { %v1381_v31 = vmul.f32 1.442695, %v1379_v28  ;;  %v1700_v28 = vld [vmem:[%s3689_s23 + $0x10] sm:$0xff]  ;;  %2713 = vmatprep.subr.bf16.mxu1 %v2712_v27 }
 0x5b5   : > { %v2898_v32 = vpop.permute.xlu1 %2897 }
 0x5b6   : > { %2909 = vpow2.f32 %v1381_v31  ;;  %v2900_v33 = vunpack.i.h.bf16 %v2898_v32  ;;  %v2899_v34 = vunpack.i.l.bf16 %v2898_v32  ;;  %v1705_v31 = vld [vmem:[%s3689_s23 + $0x38] sm:$0xff]  ;;  %v2714_v32 = vpack.c.bf16 %v1700_v28, %v1698_v26 }
 0x5b7   : > { %2911 = vpow2.f32 %v1383_v30  ;;  %v1703_v30 = vld [vmem:[%s3689_s23 + $0x28] sm:$0xff] }
 0x5b8   : > { %v2676_v35 = vpack.c.bf16 %v2900_v33, %v2899_v34  ;;  %v1702_v33 = vld [vmem:[%s3689_s23 + $0x20] sm:$0xff]  ;;  %v1704_v34 = vld [vmem:[%s3689_s23 + $0x30] sm:$0xff] }
 0x5ba   : > { %2677 = vmatprep.subr.bf16.mxu0 %v2676_v35 }
 0x5bb   : > { %2679 = vmatpush3.bf16.msra.mxu0 %v2676_v35  ;;  %v1709_v35 = vld [vmem:[%s3689_s23 + $0x58] sm:$0xff] }
 0x5bc   : > { %2697 = vmatprep.subr.bf16.mxu0 %v2696_v42 }
 0x5c0   : > { %v2910_v36 = vpop.eup %2909 }
 0x5c1   : > { %v1385_v37 = vsel %vm1174_vm2, %v2910_v36, 0.0  ;;  %v2912_v38 = vpop.eup %2911 }
 0x5c2   : > { %1386 = vadd.xlane.f32.xlu0 %v1385_v37  ;;  %v1388_v39 = vsel %vm1174_vm2, %v2912_v38, 0.0 }
 0x5c6   : > { %1389 = vadd.xlane.f32.xlu0 %v1388_v39  ;;  %v1708_v39 = vld [vmem:[%s3689_s23 + $0x50] sm:$0xff] }
 0x64f   : > { %v1387_v57 = vpop.xlane.xlu0 %1386 }
 0x650   : > { %2913 = vrcp.f32 %v1387_v57  ;;  %v1715_v57 = vld [vmem:[%s3689_s23 + $0x88] sm:$0xff] }
 0x653   : > { %v1390_v58 = vpop.xlane.xlu0 %1389 }
 0x654   : > { %2915 = vrcp.f32 %v1390_v58  ;;  %v1717_v58 = vld [vmem:[%s3689_s23 + $0x98] sm:$0xff] }
 0x65a   : > { %v2914_v59 = vpop.eup %2913 }
 0x65b   : > { %v1392_v60 = vmul.f32 %v2914_v59, %v2910_v36  ;;  %v2718_v36 = vpack.c.bf16 %v1704_v34, %v1702_v33  ;;  %v2728_v59 = vpack.c.bf16 %v1717_v58, %v1715_v57  ;;  %v2378_v33 = vld [vmem:[%s4072_s22] ss:$0 sm:$0xff]  ;;  %v1861_v57 = vld [vmem:[%s3691_s10 + $0x30] sm:$0xff]  ;;  %v1862_v58 = vld [vmem:[%s3691_s10 + $0x38] sm:$0xff] }
 0x65d   : > { %2548 = vmatprep.mubr.msk.f32.mxu0 %vm1174_vm2, %v1392_v60  ;;  %v1714_v60 = vld [vmem:[%s3689_s23 + $0x80] sm:$0xff] }
 0x65e   : > { %v2916_v63 = vpop.eup %2915  ;;  %v2730_v62 = vpack.c.bf16 %v1716_v61, %v1714_v60  ;;  %v1879_v60 = vld [vmem:[%s3691_s10 + $0xc0] sm:$0xff]  ;;  %v1880_v61 = vld [vmem:[%s3691_s10 + $0xc8] sm:$0xff] }
 0x65f   : > { %v1394_v1 = vmul.f32 %v2916_v63, %v2912_v38  ;;  %v1706_v38 = vld [vmem:[%s3689_s23 + $0x40] sm:$0xff]  ;;  %v1719_v63 = vld [vmem:[%s3689_s23 + $0xa8] sm:$0xff] }
 0x660   : > { %v2722_v40 = vpack.c.bf16 %v1708_v39, %v1706_v38 }
 0x661   : > { %2549 = vmatmul.mubr.msk.f32.vlgmr.msra.gmra.mrb[6].mxu0 %vm1174_vm2, %v1394_v1  ;;  %v1721_v1 = vld [vmem:[%s3689_s23 + $0xb8] sm:$0xff] }
 0x662   : > { %2699 = vmatpush3.bf16.msra.mxu0 %v2696_v42  ;;  %2586 = vmatprep.mubr.msk.f32.mxu0 %vm1082_vm0, %v3800_v16 }
 0x663   : > { %2701 = vmatprep.subr.bf16.mxu0 %v2700_v2 }
 0x666   : > { %2703 = vmatpush3.bf16.msra.mxu0 %v2700_v2  ;;  %v2732_v2 = vpack.c.bf16 %v1721_v1, %v1719_v63  ;;  %v2760_v63 = vpack.c.bf16 %v1880_v61, %v1879_v60  ;;  %v1864_v1 = vld [vmem:[%s3691_s10 + $0x48] sm:$0xff] }
 0x667   : > { %2705 = vmatprep.subr.bf16.mxu0 %v2704_v5 }
 0x66a   : > { %2707 = vmatpush3.bf16.msra.mxu0 %v2704_v5  ;;  %v1723_v5 = vld [vmem:[%s3689_s23 + $0xc8] sm:$0xff] }
 0x66b   : > { %2709 = vmatprep.subr.bf16.mxu0 %v2708_v9 }
 0x66e   : > { %2711 = vmatpush3.bf16.msra.mxu0 %v2708_v9  ;;  %v1722_v9 = vld [vmem:[%s3689_s23 + $0xc0] sm:$0xff] }
 0x671   : > { %2587 = vmatmul.mubr.msk.f32.vlgmr.msra.gmra.mrb[8].mxu0 %vm1082_vm0, %v3798_v15 }
 0x734   : > { %v2550_v11 = vpop.f32.mrb[6].mxu0 }
 0x735   : > { %v1475_v12 = vpop.f32.mrb[7].mxu0 }
 0x736   : > { %2567 = vmatprep.mubr.msk.f32.mxu1 %vm1082_vm0, %v1475_v12  ;;  %v2736_v12 = vpack.c.bf16 %v1725_v8, %v1723_v5  ;;  %v1866_v8 = vld [vmem:[%s3691_s10 + $0x58] sm:$0xff] }
 0x737   : > { %2568 = vmatmul.mubr.msk.f32.vlgmr.msra.gmra.mrb[6].mxu1 %vm1082_vm0, %v2550_v11  ;;  %v1724_v11 = vld [vmem:[%s3689_s23 + $0xd0] sm:$0xff] }
 0x738   : > { %1806 = vmatprep.mubr.f32.mxu1 %v3231_v10  ;;  %2715 = vmatpush1.bf16.msra.mxu1 %v2714_v32 }
 0x744   : > { %v2588_v13 = vpop.f32.mrb[8].mxu0 }
 0x745   : > { %v1637_v14 = vpop.f32.mrb[9].mxu0 }
 0x80a   : > { %v2569_v16 = vpop.f32.mrb[6].mxu1 }
 0x80b   : > { %v1643_v17 = vadd.f32 %v2588_v13, %v2569_v16  ;;  %v1556_v18 = vpop.f32.mrb[7].mxu1  ;;  %v1727_v13 = vld [vmem:[%s3689_s23 + $0xe8] sm:$0xff]  ;;  %v2738_v16 = vpack.c.bf16 %v1724_v11, %v1722_v9  ;;  %v1883_v9 = vld [vmem:[%s3691_s10 + $0xe0] sm:$0xff] }
 0x80c   : > { %v1638_v15 = vadd.f32 %v1637_v14, %v1556_v18  ;;  %v1729_v14 = vld [vmem:[%s3689_s23 + $0xf8] sm:$0xff]  ;;  %v1726_v18 = vld [vmem:[%s3689_s23 + $0xe0] sm:$0xff]  ;;  %v1884_v11 = vld [vmem:[%s3691_s10 + $0xe8] sm:$0xff] }
 0x80d   : > { %v1647_v21 = vadd.f32 %v1643_v17, %v3733_v53  ;;  %v1707_v53 = vld [vmem:[%s3689_s23 + $0x48] sm:$0xff]  ;;  %v2740_v17 = vpack.c.bf16 %v1729_v14, %v1727_v13  ;;  %v2768_v13 = vpack.c.bf16 %v1884_v11, %v1883_v9  ;;  %v1867_v14 = vld [vmem:[%s3691_s10 + $0x60] sm:$0xff] }
 0x80e   : > { %v1646_v20 = vadd.f32 %v1638_v15, %v3714_v29  ;;  %v2716_v29 = vpack.c.bf16 %v1705_v31, %v1703_v30  ;;  %v2720_v37 = vpack.c.bf16 %v1709_v35, %v1707_v53  ;;  %v1728_v15 = vld [vmem:[%s3689_s23 + $0xf0] sm:$0xff]  ;;  %v2379_v53 = vld [vmem:[%s4074_s7] ss:$0 sm:$0xff] }
 0x80f   : > { %v1656_v24 = vadd.f32 %v2377_v19, %v1647_v21  ;;  %v1872_v21 = vld [vmem:[%s3691_s10 + $0x88] sm:$0xff] }
 0x810   : > { %v1655_v22 = vadd.f32 %v2377_v19, %v1646_v20  ;;  %2717 = vmatprep.subr.bf16.mxu1 %v2716_v29  ;;  %v2742_v19 = vpack.c.bf16 %v1728_v15, %v1726_v18  ;;  %v1871_v20 = vld [vmem:[%s3691_s10 + $0x80] sm:$0xff]  ;;  %v1886_v18 = vld [vmem:[%s3691_s10 + $0xf8] sm:$0xff] }
 0x811   : > { %2719 = vmatpush1.bf16.msra.mxu1 %v2718_v36 }
 0x812   : > { %1659 = vadd.xlane.f32.xlu0 %v1655_v22  ;;  %2721 = vmatprep.subr.bf16.mxu1 %v2720_v37 }
 0x815   : > { %2723 = vmatpush1.bf16.msra.mxu1 %v2722_v40 }
 0x816   : > { %1661 = vadd.xlane.f32.xlu0 %v1656_v24  ;;  %2725 = vmatprep.subr.bf16.mxu1 %v2724_v51  ;;  %v2754_v51 = vpack.c.bf16 %v1860_v50, %v1859_v49 }
 0x819   : > { %2727 = vmatpush1.bf16.msra.mxu1 %v2726_v56  ;;  %v2756_v56 = vpack.c.bf16 %v1878_v54, %v1877_v52 }
 0x81a   : > { %2729 = vmatprep.subr.bf16.mxu1 %v2728_v59  ;;  %v2758_v59 = vpack.c.bf16 %v1862_v58, %v1861_v57 }
 0x81d   : > { %2731 = vmatpush1.bf16.msra.mxu1 %v2730_v62  ;;  %v1863_v62 = vld [vmem:[%s3691_s10 + $0x40] sm:$0xff] }
 0x81e   : > { %2733 = vmatprep.subr.bf16.mxu1 %v2732_v2  ;;  %v1881_v2 = vld [vmem:[%s3691_s10 + $0xd0] sm:$0xff]  ;;  %v2762_v4 = vpack.c.bf16 %v1864_v1, %v1863_v62 }
 0x81f   : > { %v2764_v5 = vpack.c.bf16 %v1882_v3, %v1881_v2 }
 0x821   : > { %2735 = vmatpush1.bf16.msra.mxu1 %v2734_v7  ;;  %v1865_v7 = vld [vmem:[%s3691_s10 + $0x50] sm:$0xff] }
 0x822   : > { %2737 = vmatprep.subr.bf16.mxu1 %v2736_v12  ;;  %v2766_v12 = vpack.c.bf16 %v1866_v8, %v1865_v7  ;;  %v2380_v8 = vld [vmem:[%s830_s8] ss:$0 sm:$0xff] }
 0x825   : > { %2739 = vmatpush1.bf16.msra.mxu1 %v2738_v16  ;;  %v1868_v16 = vld [vmem:[%s3691_s10 + $0x68] sm:$0xff] }
 0x826   : > { %2741 = vmatprep.subr.bf16.mxu1 %v2740_v17  ;;  %v1885_v17 = vld [vmem:[%s3691_s10 + $0xf0] sm:$0xff]  ;;  %v2770_v15 = vpack.c.bf16 %v1868_v16, %v1867_v14 }
 0x829   : > { %2743 = vmatpush1.bf16.msra.mxu1 %v2742_v19  ;;  %v2772_v19 = vpack.c.bf16 %v1886_v18, %v1885_v17 }
 0x89f   : > { %v1660_v41 = vpop.xlane.xlu0 %1659 }
 0x8a0   : > { %v1664_v42 = vmul.f32 0.0078125, %v1660_v41  ;;  %v1873_v41 = vld [vmem:[%s3691_s10 + $0x90] sm:$0xff] }
 0x8a2   : > { %v3852_v43 = vsub.f32 %v1655_v22, %v1664_v42  ;;  %v1855_v22 = vld [vmem:[%s3691_s10] sm:$0xff]  ;;  %v1874_v42 = vld [vmem:[%s3691_s10 + $0x98] sm:$0xff] }
 0x8a3   : > { %v1662_v44 = vpop.xlane.xlu0 %1661  ;;  %v2746_v25 = vpack.c.bf16 %v1856_v23, %v1855_v22 }
 0x8a4   : > { %v1665_v45 = vmul.f32 0.0078125, %v1662_v44  ;;  %v1668_v46 = vmul.f32 %v3852_v43, %v3852_v43  ;;  %v1857_v44 = vld [vmem:[%s3691_s10 + $0x10] sm:$0xff] }
 0x8a6   : > { %v3856_v47 = vsub.f32 %v1656_v24, %v1665_v45  ;;  %1670 = vadd.xlane.f32.xlu0 %v1668_v46  ;;  %v2744_v24 = vpack.c.bf16 %v1872_v21, %v1871_v20  ;;  %v1858_v45 = vld [vmem:[%s3691_s10 + $0x18] sm:$0xff]  ;;  %v1869_v20 = vld [vmem:[%s3691_s10 + $0x70] sm:$0xff] }
 0x8a7   : > { %v2750_v46 = vpack.c.bf16 %v1858_v45, %v1857_v44  ;;  %v1870_v21 = vld [vmem:[%s3691_s10 + $0x78] sm:$0xff] }
 0x8a8   : > { %v1669_v48 = vmul.f32 %v3856_v47, %v3856_v47  ;;  %2745 = vmatprep.subr.bf16.mxu0 %v2744_v24  ;;  %v2774_v22 = vpack.c.bf16 %v1870_v21, %v1869_v20  ;;  %v1730_v24 = vld [vmem:[%s3673_s17] sm:$0x3] }
 0x8a9   : > { %2747 = vmatpush3.bf16.msra.mxu0 %v2746_v25  ;;  %v1735_v23 = vrot.slane %v1730_v24, %v901_v0  ;;  %v1739_v25 = vrot.slane %v1730_v24, %v905_v6 }
 0x8aa   : > { %1672 = vadd.xlane.f32.xlu0 %v1669_v48 }
 0x933   : > { %v1671_v26 = vpop.xlane.xlu0 %1670 }
 0x934   : > { %v1674_v27 = vmul.f32 0.0078125, %v1671_v26 }
 0x936   : > { %v1676_v28 = vadd.f32 1e-12, %v1674_v27 }
 0x937   : > { %v1673_v30 = vpop.xlane.xlu0 %1672 }
 0x938   : > { %2917 = vrsqrt.f32 %v1676_v28  ;;  %v1675_v31 = vmul.f32 0.0078125, %v1673_v30 }
 0x93a   : > { %v1677_v32 = vadd.f32 1e-12, %v1675_v31 }
 0x93c   : > { %2919 = vrsqrt.f32 %v1677_v32 }
 0x942   : > { %v2918_v29 = vpop.eup %2917 }
 0x943   : > { %v1680_v34 = vmul.f32 %v2918_v29, %v3852_v43  ;;  %v2748_v43 = vpack.c.bf16 %v1874_v42, %v1873_v41 }
 0x945   : > { %v1688_v35 = vmul.f32 %v2378_v33, %v1680_v34  ;;  %2749 = vmatprep.subr.bf16.mxu0 %v2748_v43 }
 0x946   : > { %v2920_v36 = vpop.eup %2919  ;;  %2751 = vmatpush3.bf16.msra.mxu0 %v2750_v46 }
 0x947   : > { %v3895_v37 = vadd.f32 %v2379_v53, %v1688_v35  ;;  %v1681_v38 = vmul.f32 %v2920_v36, %v3856_v47  ;;  %v1875_v47 = vld [vmem:[%s3691_s10 + $0xa0] sm:$0xff] }
 0x949   : > { %1807 = vmatmul.mubr.f32.vlgmr.msra.gmra.mrb[8].mxu1 %v3895_v37  ;;  %v1689_v39 = vmul.f32 %v2378_v33, %v1681_v38 }
 0x94a   : > { %1812 = vmatprep.mubr.f32.mxu1 %v3231_v10  ;;  %v1876_v10 = vld [vmem:[%s3691_s10 + $0xa8] sm:$0xff] }
 0x94b   : > { %v3900_v40 = vadd.f32 %v2379_v53, %v1689_v39  ;;  %v2752_v48 = vpack.c.bf16 %v1876_v10, %v1875_v47 }
 0x94d   : > { %1813 = vmatmul.mubr.f32.gmra.mrb[10].mxu1 %v3900_v40  ;;  %2753 = vmatprep.subr.bf16.mxu0 %v2752_v48 }
 0x94e   : > { %2755 = vmatpush3.bf16.msra.mxu0 %v2754_v51 }
 0x94f   : > { %2757 = vmatprep.subr.bf16.mxu0 %v2756_v56 }
 0x952   : > { %2759 = vmatpush3.bf16.msra.mxu0 %v2758_v59 }
 0x953   : > { %2761 = vmatprep.subr.bf16.mxu0 %v2760_v63 }
 0x956   : > { %2763 = vmatpush3.bf16.msra.mxu0 %v2762_v4 }
 0x957   : > { %2765 = vmatprep.subr.bf16.mxu0 %v2764_v5 }
 0x95a   : > { %2767 = vmatpush3.bf16.msra.mxu0 %v2766_v12 }
 0x95b   : > { %2769 = vmatprep.subr.bf16.mxu0 %v2768_v13 }
 0x95e   : > { %2771 = vmatpush3.bf16.msra.mxu0 %v2770_v15 }
 0x95f   : > { %2773 = vmatprep.subr.bf16.mxu0 %v2772_v19 }
 0x962   : > { %2775 = vmatpush3.bf16.msra.mxu0 %v2774_v22 }
 0xa1c   : > { %v1808_v26 = vpop.f32.mrb[8].mxu1 }
 0xa1d   : > { %v1809_v27 = vadd.f32 %v1808_v26, %v1735_v23  ;;  %v1810_v28 = vpop.f32.mrb[9].mxu1 }
 0xa1e   : > { %v1811_v30 = vadd.f32 %v1810_v28, %v1739_v25 }
 0xa1f   : > { %v1823_v31 = vmul.f32 0.044715, %v1809_v27  ;;  %v1819_v58 = vmul.f32 0.5, %v1809_v27 }
 0xa20   : > { %v1824_v32 = vmul.f32 0.044715, %v1811_v30  ;;  %v1814_v29 = vpop.f32.mrb[10].mxu1  ;;  %v1820_v56 = vmul.f32 0.5, %v1811_v30 }
 0xa21   : > { %v1827_v33 = vmul.f32 %v1823_v31, %v1809_v27  ;;  %v1815_v34 = vadd.f32 %v1814_v29, %v1735_v23  ;;  %v1816_v53 = vpop.f32.mrb[11].mxu1  ;;  %v2381_v29 = vld [vmem:[%s833_s29] ss:$0 sm:$0xff]  ;;  %s4078_s29 = sld [smem:[#allocation35_spill]] (!%p2383_p13) }
 0xa22   : > { %v1828_v35 = vmul.f32 %v1824_v32, %v1811_v30  ;;  %v1817_v36 = vadd.f32 %v1816_v53, %v1739_v25 }
 0xa23   : > { %v1831_v38 = vmul.f32 %v1827_v33, %v1809_v27  ;;  %v1825_v39 = vmul.f32 0.044715, %v1815_v34  ;;  %v1821_v3 = vmul.f32 0.5, %v1815_v34 }
 0xa24   : > { %v1826_v41 = vmul.f32 0.044715, %v1817_v36  ;;  %v1832_v42 = vmul.f32 %v1828_v35, %v1811_v30  ;;  %v1822_v1 = vmul.f32 0.5, %v1817_v36 }
 0xa25   : > { %v1835_v0 = vadd.f32 %v1831_v38, %v1809_v27  ;;  %v1829_v43 = vmul.f32 %v1825_v39, %v1815_v34 }
 0xa26   : > { %v1830_v55 = vmul.f32 %v1826_v41, %v1817_v36  ;;  %v1836_v6 = vadd.f32 %v1832_v42, %v1811_v30 }
 0xa27   : > { %v1839_v44 = vmul.f32 0.7978846, %v1835_v0  ;;  %v1833_v45 = vmul.f32 %v1829_v43, %v1815_v34  ;;  %v3233_v0 = vmov (!%p2383_p13), 0.0|0.0   ;;  %v3235_v43 = vmov (!%p2383_p13), 0.0  }
 0xa28   : > { %v1840_v46 = vmul.f32 0.7978846, %v1836_v6  ;;  %v1834_v47 = vmul.f32 %v1830_v55, %v1817_v36  ;;  %2776 = vmatprep.subr.bf16.mxu0 (!%p2383_p13), %v3233_v0  ;;  %v2017_v55 = vld [vmem:[#allocation8] sm:$0x3] (!%p2383_p13)  ;;  %v2385_v6 = vld [vmem:[#allocation9] ss:$0 sm:$0xff] (!%p2383_p13) }
 0xa29   : > { %2921 = vtanh.f32 %v1839_v44  ;;  %v1837_v10 = vadd.f32 %v1833_v45, %v1815_v34  ;;  %v2382_v34 = vld [vmem:[%s836_s28] ss:$0 sm:$0xff] }
 0xa2a   : > { %2923 = vtanh.f32 %v1840_v46  ;;  %v1838_v48 = vadd.f32 %v1834_v47, %v1817_v36 }
 0xa2b   : > { %v1841_v49 = vmul.f32 0.7978846, %v1837_v10  ;;  %v2386_v10 = vld [vmem:[#allocation3] ss:$0 sm:$0xff] (!%p2383_p13) }
 0xa2c   : > { %v1842_v50 = vmul.f32 0.7978846, %v1838_v48 }
 0xa2d   : > { %2925 = vtanh.f32 %v1841_v49 }
 0xa2e   : > { %2927 = vtanh.f32 %v1842_v50 }
 0xa33   : > { %v2922_v51 = vpop.eup %2921 }
 0xa34   : > { %v2924_v52 = vpop.eup %2923  ;;  %v1847_v54 = vadd.f32 1.0, %v2922_v51 }
 0xa35   : > { %v1848_v57 = vadd.f32 1.0, %v2924_v52 }
 0xa36   : > { %v1851_v62 = vmul.f32 %v1847_v54, %v1819_v58 }
 0xa37   : > { %v2926_v59 = vpop.eup %2925  ;;  %v1852_v60 = vmul.f32 %v1848_v57, %v1820_v56 }
 0xa38   : > { %v2928_v61 = vpop.eup %2927  ;;  %v1849_v63 = vadd.f32 1.0, %v2926_v59 }
 0xa39   : > { %1958 = vmatprep.mubr.f32.mxu0 %v1852_v60  ;;  %v1850_v2 = vadd.f32 1.0, %v2928_v61 }
 0xa3a   : > { %1959 = vmatmul.mubr.f32.vlgmr.msra.gmra.mrb[10].mxu0 %v1851_v62  ;;  %v1853_v5 = vmul.f32 %v1849_v63, %v1821_v3 }
 0xa3b   : > { %v1854_v4 = vmul.f32 %v1850_v2, %v1822_v1 }
 0xa3d   : > { %1963 = vmatprep.mubr.f32.mxu0 %v1854_v4 }
 0xa3e   : > { %1964 = vmatmul.mubr.f32.gmra.mrb[12].mxu0 %v1853_v5 }
 0xa3f   : > { %2593 = vmatprep.mubr.msk.f32.mxu0 (!%p2383_p13), %vm3234_vm3, %v3235_v43 }
 0xb0d   : > { %v2479_v7 = vpop.f32.mrb[10].mxu0 }
 0xb0e   : > { %v2480_v9 = vpop.f32.mrb[11].mxu0 }
 0xb0f   : > { %v2481_v11 = vadd.f32 %v2480_v9, %v2479_v7 }
 0xb11   : > { %v1961_v12 = vadd.f32 %v2481_v11, %v2380_v8  ;;  %v2482_v13 = vpop.f32.mrb[12].mxu0 }
 0xb12   : > { %v2483_v14 = vpop.f32.mrb[13].mxu0 }
 0xb13   : > { %v2484_v16 = vadd.f32 %v2483_v14, %v2482_v13  ;;  %v1969_v17 = vadd.f32 %v1961_v12, %v3895_v37 }
 0xb15   : > { %v1966_v18 = vadd.f32 %v2484_v16, %v2380_v8  ;;  %1973 = vadd.xlane.f32.xlu1 %v1969_v17 }
 0xb17   : > { %v1970_v15 = vadd.f32 %v1966_v18, %v3900_v40 }
 0xb19   : > { %1975 = vadd.xlane.f32.xlu0 %v1970_v15 }
 0xba2   : > { %v1974_v19 = vpop.xlane.xlu1 %1973 }
 0xba3   : > { %v1977_v20 = vmul.f32 0.0078125, %v1974_v19 }
 0xba5   : > { %v1979_v21 = vsub.f32 %v1969_v17, %v1977_v20 }
 0xba6   : > { %v1976_v22 = vpop.xlane.xlu0 %1975 }
 0xba7   : > { %v1978_v24 = vmul.f32 0.0078125, %v1976_v22  ;;  %v1981_v23 = vmul.f32 %v1979_v21, %v1979_v21 }
 0xba9   : > { %v1980_v25 = vsub.f32 %v1970_v15, %v1978_v24  ;;  %1983 = vadd.xlane.f32.xlu0 %v1981_v23 }
 0xbab   : > { %v1982_v26 = vmul.f32 %v1980_v25, %v1980_v25 }
 0xbad   : > { %1985 = vadd.xlane.f32.xlu0 %v1982_v26 }
 0xc36   : > { %v1984_v27 = vpop.xlane.xlu0 %1983 }
 0xc37   : > { %v1987_v28 = vmul.f32 0.0078125, %v1984_v27 }
 0xc39   : > { %v1989_v37 = vadd.f32 1e-12, %v1987_v28 }
 0xc3a   : > { %v1986_v30 = vpop.xlane.xlu0 %1985 }
 0xc3b   : > { %2929 = vrsqrt.f32 %v1989_v37  ;;  %v1988_v31 = vmul.f32 0.0078125, %v1986_v30 }
 0xc3d   : > { %v1990_v40 = vadd.f32 1e-12, %v1988_v31 }
 0xc3f   : > { %2931 = vrsqrt.f32 %v1990_v40 }
 0xc45   : > { %v2930_v32 = vpop.eup %2929 }
 0xc46   : > { %v1993_v33 = vmul.f32 %v2930_v32, %v1979_v21 }
 0xc48   : > { %v2001_v53 = vmul.f32 %v2381_v29, %v1993_v33 }
 0xc49   : > { %v2932_v35 = vpop.eup %2931 }
 0xc4a   : > { %v2009_v36 = vadd.f32 %v2382_v34, %v2001_v53  ;;  %v1994_v38 = vmul.f32 %v2932_v35, %v1980_v25  ;;  %2016 = sbr.rel (%p2383_p13) target bundleno = 3543 (0xdd7), region = 128 }
 0xc4c   : > { %2011 = vst [vmem:[#allocation2] sm:$0xff] %v2009_v36  ;;  %v2002_v39 = vmul.f32 %v2381_v29, %v1994_v38 }
 0xc4e   : > { %v2010_v41 = vadd.f32 %v2382_v34, %v2002_v39 }
 0xc50   : > { %2012 = vst [vmem:[#allocation2 + $0x8] sm:$0xff] %v2010_v41  ;;  %v2777_v42 = vpack.c.bf16 (!%p2383_p13), %v2010_v41, %v2009_v36 }
 0xc52   : > { %2778 = vmatpush3.bf16.msra.mxu0 %v2777_v42 }
 0xc55   : > { %2594 = vmatmul.mubr.msk.f32.vlgmr.msra.gmra.mrb[0].mxu0 %vm1174_vm2, %v2017_v55 }
 0xd28   : > { %v2087_v44 = vpop.f32.mrb[0].mxu0 }
 0xd29   : > { %v2098_v45 = vmul.f32 %v2385_v6, %v2087_v44  ;;  %v2595_v46 = vpop.f32.mrb[1].mxu0 }
 0xd2b   : > { %v2100_v47 = vsel %vm2099_vm4, %v2098_v45, 0.0 }
 0xd2c   : > { %2101 = vadd.xlane.f32.xlu0 %v2100_v47 }
 0xdb9   : > { %v2102_v48 = vpop.xlane.xlu0 %2101 }
 0xdba   : > { %v2110_v49 = vadd.f32 %v2386_v10, %v2102_v48 }
 0xdbc   : > { %v2387_v50 = vmul.f32 -1.442695, %v2110_v49 }
 0xdbe   : > { %2933 = vpow2.f32 %v2387_v50 }
 0xdc8   : > { %v2934_v51 = vpop.eup %2933 }
 0xdc9   : > { %v2114_v52 = vadd.f32 1.0, %v2934_v51 }
 0xdcb   : > { %2935 = vrcp.f32 %v2114_v52 }
 0xdd5   : > { %v2936_v54 = vpop.eup %2935 }
 0xdd6   : > { %2118 = vst.msk [vmem:[%s4078_s29] sm:$0x3] %vm2117_vm5, %v2936_v54 }
 0xdd7 PF: > { %s4079_s29 = sld [smem:[#allocation20_spill]]  ;;  %s4080_s28 = sld [smem:[#allocation19_spill]] }
 0xdd8   : > { %s4081_s23 = sld [smem:[#allocation21_spill]]  ;;  %s4082_s26 = smov %s3207_s27 }
 0xddd   : > { %p29_p3 = scmp.ge.s32.totalorder %s4079_s29, 4   ;;  %s4083_s27 = smov %s4080_s28 }
 0xdde   : > { %s4084_s28 = smov %s4081_s23 }
 0xddf   :  { %31 = sbr.rel (!%p29_p3) target bundleno = 19 (0x13), region = 204 }
 0xde6   :  { %2130 = vsyncpa [#allocation5], 1 }
 0xde7   :  { %2132 = vsyncpa [#allocation5 + $0x1], 1 }
 0xde8   :  { %2133 = vsyncpa [#allocation7], 1 }
 0xde9   :  { %2134 = vsyncpa [#allocation10], 1 }

</bundles_post_ra>
